<compile_context>
chip_gen: v7x
topology: tpu7x:2x2x1
jax: 0.10.0
libtpu: 0.0.40
codegen_flags: <defaults>
</compile_context>

<pallas_src>
import functools

import numpy as np

import jax
import jax.numpy as jnp
from jax.experimental import pallas as pl
from jax.experimental.pallas import tpu as pltpu


def _make_tap_masks(H, W):
    """masks[tap, p] = 1.0 iff pixel p=(h,w) has an in-bounds neighbor at
    (h+dy-1, w+dx-1) for tap = dy*3+dx.  Precomputed on host (trace time)."""
    h = np.arange(H).repeat(W)          # [H*W]
    w = np.tile(np.arange(W), H)        # [H*W]
    masks = np.zeros((9, H * W), np.float32)
    for dy in range(3):
        for dx in range(3):
            hh = h + dy - 1
            ww = w + dx - 1
            valid = (hh >= 0) & (hh < H) & (ww >= 0) & (ww < W)
            masks[dy * 3 + dx] = valid.astype(np.float32)
    return jnp.asarray(masks)


def _fused_resnet_kernel(x_ref, wa_ref, wb_ref, m_ref, out_ref, *, H, W, C,
                         num_blocks):
    """All blocks fused.  Shapes (per grid step = one batch element):
         x_ref   [1, C, H*W]            activation, channel-major, lane-dense
         wa_ref  [num_blocks, C, 9*C]   conv1 weights, flattened (o, tap*C + i)
         wb_ref  [num_blocks, C, 9*C]   conv2 weights * scale, flattened
         m_ref   [9, H*W]               per-tap validity masks
         out_ref [1, C, H*W]
    """
    HW = H * W
    x = x_ref[0].astype(jnp.float32)          # [C, HW]
    masks = m_ref[...]                        # [9, HW]

    def shift_cols(v, off):
        # y[:, p] = v[:, p + off]  for in-range p+off (wrapped values are masked)
        if off == 0:
            return v
        n = v.shape[-1]
        k = off % n
        return jnp.concatenate([v[:, k:], v[:, :k]], axis=-1)

    def conv3x3(act, w_flat):
        # act: [C, HW], w_flat: [Cout, 9*C] -> [Cout, HW] in f32 (one MXU matmul)
        taps = []
        for dy in range(3):
            for dx in range(3):
                tap = dy * 3 + dx
                off = (dy - 1) * W + (dx - 1)
                shifted = shift_cols(act, off)
                taps.append(shifted * masks[tap:tap + 1, :])
        patch = jnp.concatenate(taps, axis=0)             # [9*C, HW]
        return jnp.dot(w_flat, patch, preferred_element_type=jnp.float32)

    for b in range(num_blocks):
        w1 = wa_ref[b].astype(jnp.float32)                # [C, 9*C]
        w2 = wb_ref[b].astype(jnp.float32)                # scale already folded in
        y1 = jnp.maximum(conv3x3(x, w1), 0.0)             # [C, HW]
        y2 = conv3x3(y1, w2)                              # [C, HW]
        x = x + y2                                        # residual (scale folded)

    out_ref[0] = x.astype(out_ref.dtype)


def resnet_blocks_forward(x_nchw, weights, scale=0.1):
    """ResNetBlocksModule.forward.  x_nchw: [N, C, H, W]; weights: list of
    (w1_oihw, w2_oihw) per block."""
    N, C, H, W = x_nchw.shape
    HW = H * W
    num_blocks = len(weights)

    # Trace-time weight prep (tiny): OIHW -> [Cout, 9*Cin] with column order
    # (tap * Cin + i), tap = kh*3 + kw.  Fold the 0.1 residual scale into w2.
    wa = jnp.stack([jnp.transpose(w1, (0, 2, 3, 1)).reshape(C, 9 * C)
                    for (w1, _) in weights])
    wb = jnp.stack([jnp.transpose(w2 * scale, (0, 2, 3, 1)).reshape(C, 9 * C)
                    for (_, w2) in weights])
    masks = _make_tap_masks(H, W)

    # [N,C,H,W] -> [N,C,H*W] is a free (layout-preserving) reshape.
    x_flat = x_nchw.reshape(N, C, HW)

    kernel = functools.partial(_fused_resnet_kernel, H=H, W=W, C=C,
                               num_blocks=num_blocks)
    out_flat = pl.pallas_call(
        kernel,
        out_shape=jax.ShapeDtypeStruct((N, C, HW), x_nchw.dtype),
        grid=(N,),
        in_specs=[
            pl.BlockSpec((1, C, HW), lambda n: (n, 0, 0)),
            pl.BlockSpec((num_blocks, C, 9 * C), lambda n: (0, 0, 0)),
            pl.BlockSpec((num_blocks, C, 9 * C), lambda n: (0, 0, 0)),
            pl.BlockSpec((9, HW), lambda n: (0, 0)),
        ],
        out_specs=pl.BlockSpec((1, C, HW), lambda n: (n, 0, 0)),
        compiler_params=pltpu.CompilerParams(
            dimension_semantics=("parallel",)),
    )(x_flat, wa, wb, masks)

    return out_flat.reshape(N, C, H, W)


def _reference_forward(x_nchw, weights, scale=0.1):
    """Pure-JAX reference (lax.conv) for validation."""
    x = x_nchw
    dn = jax.lax.conv_dimension_numbers(x.shape, weights[0][0].shape,
                                        ("NCHW", "OIHW", "NCHW"))
    for (w1, w2) in weights:
        y1 = jax.lax.conv_general_dilated(x, w1, (1, 1), ((1, 1), (1, 1)),
                                          dimension_numbers=dn)
        y1 = jnp.maximum(y1, 0.0)
        y2 = jax.lax.conv_general_dilated(y1, w2, (1, 1), ((1, 1), (1, 1)),
                                          dimension_numbers=dn)
        x = x + scale * y2
    return x


if __name__ == "__main__":
    # filter_size = (kernel_size=3, in_c=4, out_c=4), num_blocks=2
    N, C, Hs, Ws = 2, 4, 16, 16
    KS, NUM_BLOCKS = 3, 2

    key = jax.random.PRNGKey(0)
    key, kx = jax.random.split(key)
    x = jax.random.normal(kx, (N, C, Hs, Ws), dtype=jnp.float32)

    # Deterministic weight init (Conv2d-style uniform fan-in scaling), OIHW.
    weights = []
    fan_in = C * KS * KS
    bound = 1.0 / (fan_in ** 0.5)
    for _ in range(NUM_BLOCKS):
        key, k1, k2 = jax.random.split(key, 3)
        w1 = jax.random.uniform(k1, (C, C, KS, KS), jnp.float32, -bound, bound)
        w2 = jax.random.uniform(k2, (C, C, KS, KS), jnp.float32, -bound, bound)
        weights.append((w1, w2))

    out = resnet_blocks_forward(x, weights, scale=0.1)
    out = jax.block_until_ready(out)

    ref = _reference_forward(x, weights, scale=0.1)
    assert out.shape == (N, C, Hs, Ws)
    assert jnp.allclose(out, ref, rtol=1e-4, atol=1e-4), "mismatch vs reference"

    print("KERNEL_OK")
</pallas_src>

<mosaic_0001>
module attributes {stable_mosaic.version = 11 : i64} {
  func.func @_fused_resnet_kernel(%arg0: i32, %arg1: memref<1x4x256xf32, #tpu.memory_space<vmem>>, %arg2: memref<2x4x36xf32, #tpu.memory_space<vmem>>, %arg3: memref<2x4x36xf32, #tpu.memory_space<vmem>>, %arg4: memref<9x256xf32, #tpu.memory_space<vmem>>, %arg5: memref<1x4x256xf32, #tpu.memory_space<vmem>>) attributes {dimension_semantics = [#tpu.dimension_semantics<parallel>], iteration_bounds = array<i64: 2>, scalar_prefetch = 0 : i64, scratch_operands = 0 : i64, tpu.core_type = #tpu.core_type<tc>, window_params = [{transform_indices = @transform_0, window_bounds = array<i64: 1, 4, 256>}, {pipeline_mode = #tpu.pipeline_mode<synchronous>, transform_indices = @transform_1, window_bounds = array<i64: 2, 4, 36>}, {pipeline_mode = #tpu.pipeline_mode<synchronous>, transform_indices = @transform_2, window_bounds = array<i64: 2, 4, 36>}, {pipeline_mode = #tpu.pipeline_mode<synchronous>, transform_indices = @transform_3, window_bounds = array<i64: 9, 256>}, {transform_indices = @transform_4, window_bounds = array<i64: 1, 4, 256>}]} {
    %c0 = arith.constant 0 : index
    %c0_0 = arith.constant 0 : index
    %c0_1 = arith.constant 0 : index
    %0 = vector.load %arg1[%c0, %c0_0, %c0_1] : memref<1x4x256xf32, #tpu.memory_space<vmem>>, vector<1x4x256xf32>
    %1 = vector.shape_cast %0 : vector<1x4x256xf32> to vector<4x256xf32>
    %c0_2 = arith.constant 0 : index
    %c0_3 = arith.constant 0 : index
    %2 = vector.load %arg4[%c0_2, %c0_3] : memref<9x256xf32, #tpu.memory_space<vmem>>, vector<9x256xf32>
    %c0_4 = arith.constant 0 : index
    %c0_5 = arith.constant 0 : index
    %c0_6 = arith.constant 0 : index
    %3 = vector.load %arg2[%c0_4, %c0_5, %c0_6] : memref<2x4x36xf32, #tpu.memory_space<vmem>>, vector<1x4x36xf32>
    %4 = vector.shape_cast %3 : vector<1x4x36xf32> to vector<4x36xf32>
    %c0_7 = arith.constant 0 : index
    %c0_8 = arith.constant 0 : index
    %c0_9 = arith.constant 0 : index
    %5 = vector.load %arg3[%c0_7, %c0_8, %c0_9] : memref<2x4x36xf32, #tpu.memory_space<vmem>>, vector<1x4x36xf32>
    %6 = vector.shape_cast %5 : vector<1x4x36xf32> to vector<4x36xf32>
    %7 = vector.extract_strided_slice %1 {offsets = [0, 239], sizes = [4, 17], strides = [1, 1]} : vector<4x256xf32> to vector<4x17xf32>
    %8 = vector.extract_strided_slice %1 {offsets = [0, 0], sizes = [4, 239], strides = [1, 1]} : vector<4x256xf32> to vector<4x239xf32>
    %9 = tpu.concatenate %7, %8 in 1 : vector<4x17xf32>, vector<4x239xf32> -> vector<4x256xf32>
    %10 = vector.extract_strided_slice %2 {offsets = [0, 0], sizes = [1, 256], strides = [1, 1]} : vector<9x256xf32> to vector<1x256xf32>
    %11 = vector.broadcast %10 : vector<1x256xf32> to vector<4x256xf32>
    %12 = arith.mulf %9, %11 : vector<4x256xf32>
    %13 = vector.extract_strided_slice %1 {offsets = [0, 240], sizes = [4, 16], strides = [1, 1]} : vector<4x256xf32> to vector<4x16xf32>
    %14 = vector.extract_strided_slice %1 {offsets = [0, 0], sizes = [4, 240], strides = [1, 1]} : vector<4x256xf32> to vector<4x240xf32>
    %15 = tpu.concatenate %13, %14 in 1 : vector<4x16xf32>, vector<4x240xf32> -> vector<4x256xf32>
    %16 = vector.extract_strided_slice %2 {offsets = [1, 0], sizes = [1, 256], strides = [1, 1]} : vector<9x256xf32> to vector<1x256xf32>
    %17 = vector.broadcast %16 : vector<1x256xf32> to vector<4x256xf32>
    %18 = arith.mulf %15, %17 : vector<4x256xf32>
    %19 = vector.extract_strided_slice %1 {offsets = [0, 241], sizes = [4, 15], strides = [1, 1]} : vector<4x256xf32> to vector<4x15xf32>
    %20 = vector.extract_strided_slice %1 {offsets = [0, 0], sizes = [4, 241], strides = [1, 1]} : vector<4x256xf32> to vector<4x241xf32>
    %21 = tpu.concatenate %19, %20 in 1 : vector<4x15xf32>, vector<4x241xf32> -> vector<4x256xf32>
    %22 = vector.extract_strided_slice %2 {offsets = [2, 0], sizes = [1, 256], strides = [1, 1]} : vector<9x256xf32> to vector<1x256xf32>
    %23 = vector.broadcast %22 : vector<1x256xf32> to vector<4x256xf32>
    %24 = arith.mulf %21, %23 : vector<4x256xf32>
    %25 = vector.extract_strided_slice %1 {offsets = [0, 255], sizes = [4, 1], strides = [1, 1]} : vector<4x256xf32> to vector<4x1xf32>
    %26 = vector.extract_strided_slice %1 {offsets = [0, 0], sizes = [4, 255], strides = [1, 1]} : vector<4x256xf32> to vector<4x255xf32>
    %27 = tpu.concatenate %25, %26 in 1 : vector<4x1xf32>, vector<4x255xf32> -> vector<4x256xf32>
    %28 = vector.extract_strided_slice %2 {offsets = [3, 0], sizes = [1, 256], strides = [1, 1]} : vector<9x256xf32> to vector<1x256xf32>
    %29 = vector.broadcast %28 : vector<1x256xf32> to vector<4x256xf32>
    %30 = arith.mulf %27, %29 : vector<4x256xf32>
    %31 = vector.extract_strided_slice %2 {offsets = [4, 0], sizes = [1, 256], strides = [1, 1]} : vector<9x256xf32> to vector<1x256xf32>
    %32 = vector.broadcast %31 : vector<1x256xf32> to vector<4x256xf32>
    %33 = arith.mulf %1, %32 : vector<4x256xf32>
    %34 = vector.extract_strided_slice %1 {offsets = [0, 1], sizes = [4, 255], strides = [1, 1]} : vector<4x256xf32> to vector<4x255xf32>
    %35 = vector.extract_strided_slice %1 {offsets = [0, 0], sizes = [4, 1], strides = [1, 1]} : vector<4x256xf32> to vector<4x1xf32>
    %36 = tpu.concatenate %34, %35 in 1 : vector<4x255xf32>, vector<4x1xf32> -> vector<4x256xf32>
    %37 = vector.extract_strided_slice %2 {offsets = [5, 0], sizes = [1, 256], strides = [1, 1]} : vector<9x256xf32> to vector<1x256xf32>
    %38 = vector.broadcast %37 : vector<1x256xf32> to vector<4x256xf32>
    %39 = arith.mulf %36, %38 : vector<4x256xf32>
    %40 = vector.extract_strided_slice %1 {offsets = [0, 15], sizes = [4, 241], strides = [1, 1]} : vector<4x256xf32> to vector<4x241xf32>
    %41 = vector.extract_strided_slice %1 {offsets = [0, 0], sizes = [4, 15], strides = [1, 1]} : vector<4x256xf32> to vector<4x15xf32>
    %42 = tpu.concatenate %40, %41 in 1 : vector<4x241xf32>, vector<4x15xf32> -> vector<4x256xf32>
    %43 = vector.extract_strided_slice %2 {offsets = [6, 0], sizes = [1, 256], strides = [1, 1]} : vector<9x256xf32> to vector<1x256xf32>
    %44 = vector.broadcast %43 : vector<1x256xf32> to vector<4x256xf32>
    %45 = arith.mulf %42, %44 : vector<4x256xf32>
    %46 = vector.extract_strided_slice %1 {offsets = [0, 16], sizes = [4, 240], strides = [1, 1]} : vector<4x256xf32> to vector<4x240xf32>
    %47 = vector.extract_strided_slice %1 {offsets = [0, 0], sizes = [4, 16], strides = [1, 1]} : vector<4x256xf32> to vector<4x16xf32>
    %48 = tpu.concatenate %46, %47 in 1 : vector<4x240xf32>, vector<4x16xf32> -> vector<4x256xf32>
    %49 = vector.extract_strided_slice %2 {offsets = [7, 0], sizes = [1, 256], strides = [1, 1]} : vector<9x256xf32> to vector<1x256xf32>
    %50 = vector.broadcast %49 : vector<1x256xf32> to vector<4x256xf32>
    %51 = arith.mulf %48, %50 : vector<4x256xf32>
    %52 = vector.extract_strided_slice %1 {offsets = [0, 17], sizes = [4, 239], strides = [1, 1]} : vector<4x256xf32> to vector<4x239xf32>
    %53 = vector.extract_strided_slice %1 {offsets = [0, 0], sizes = [4, 17], strides = [1, 1]} : vector<4x256xf32> to vector<4x17xf32>
    %54 = tpu.concatenate %52, %53 in 1 : vector<4x239xf32>, vector<4x17xf32> -> vector<4x256xf32>
    %55 = vector.extract_strided_slice %2 {offsets = [8, 0], sizes = [1, 256], strides = [1, 1]} : vector<9x256xf32> to vector<1x256xf32>
    %56 = vector.broadcast %55 : vector<1x256xf32> to vector<4x256xf32>
    %57 = arith.mulf %54, %56 : vector<4x256xf32>
    %58 = tpu.concatenate %12, %18, %24, %30, %33, %39, %45, %51, %57 in 0 : vector<4x256xf32>, vector<4x256xf32>, vector<4x256xf32>, vector<4x256xf32>, vector<4x256xf32>, vector<4x256xf32>, vector<4x256xf32>, vector<4x256xf32>, vector<4x256xf32> -> vector<36x256xf32>
    %cst = arith.constant dense<0.000000e+00> : vector<4x256xf32>
    %59 = tpu.matmul %4, %58, %cst {dimension_numbers = #tpu.dot_dimension_numbers<[1], [0], [0], [1], [0, 0, 1, 1], [], []>} : vector<4x36xf32>, vector<36x256xf32>, vector<4x256xf32> -> vector<4x256xf32>
    %cst_10 = arith.constant 0.000000e+00 : f32
    %60 = vector.broadcast %cst_10 : f32 to vector<4x256xf32>
    %61 = arith.maximumf %59, %60 : vector<4x256xf32>
    %62 = vector.extract_strided_slice %61 {offsets = [0, 239], sizes = [4, 17], strides = [1, 1]} : vector<4x256xf32> to vector<4x17xf32>
    %63 = vector.extract_strided_slice %61 {offsets = [0, 0], sizes = [4, 239], strides = [1, 1]} : vector<4x256xf32> to vector<4x239xf32>
    %64 = tpu.concatenate %62, %63 in 1 : vector<4x17xf32>, vector<4x239xf32> -> vector<4x256xf32>
    %65 = vector.extract_strided_slice %2 {offsets = [0, 0], sizes = [1, 256], strides = [1, 1]} : vector<9x256xf32> to vector<1x256xf32>
    %66 = vector.broadcast %65 : vector<1x256xf32> to vector<4x256xf32>
    %67 = arith.mulf %64, %66 : vector<4x256xf32>
    %68 = vector.extract_strided_slice %61 {offsets = [0, 240], sizes = [4, 16], strides = [1, 1]} : vector<4x256xf32> to vector<4x16xf32>
    %69 = vector.extract_strided_slice %61 {offsets = [0, 0], sizes = [4, 240], strides = [1, 1]} : vector<4x256xf32> to vector<4x240xf32>
    %70 = tpu.concatenate %68, %69 in 1 : vector<4x16xf32>, vector<4x240xf32> -> vector<4x256xf32>
    %71 = vector.extract_strided_slice %2 {offsets = [1, 0], sizes = [1, 256], strides = [1, 1]} : vector<9x256xf32> to vector<1x256xf32>
    %72 = vector.broadcast %71 : vector<1x256xf32> to vector<4x256xf32>
    %73 = arith.mulf %70, %72 : vector<4x256xf32>
    %74 = vector.extract_strided_slice %61 {offsets = [0, 241], sizes = [4, 15], strides = [1, 1]} : vector<4x256xf32> to vector<4x15xf32>
    %75 = vector.extract_strided_slice %61 {offsets = [0, 0], sizes = [4, 241], strides = [1, 1]} : vector<4x256xf32> to vector<4x241xf32>
    %76 = tpu.concatenate %74, %75 in 1 : vector<4x15xf32>, vector<4x241xf32> -> vector<4x256xf32>
    %77 = vector.extract_strided_slice %2 {offsets = [2, 0], sizes = [1, 256], strides = [1, 1]} : vector<9x256xf32> to vector<1x256xf32>
    %78 = vector.broadcast %77 : vector<1x256xf32> to vector<4x256xf32>
    %79 = arith.mulf %76, %78 : vector<4x256xf32>
    %80 = vector.extract_strided_slice %61 {offsets = [0, 255], sizes = [4, 1], strides = [1, 1]} : vector<4x256xf32> to vector<4x1xf32>
    %81 = vector.extract_strided_slice %61 {offsets = [0, 0], sizes = [4, 255], strides = [1, 1]} : vector<4x256xf32> to vector<4x255xf32>
    %82 = tpu.concatenate %80, %81 in 1 : vector<4x1xf32>, vector<4x255xf32> -> vector<4x256xf32>
    %83 = vector.extract_strided_slice %2 {offsets = [3, 0], sizes = [1, 256], strides = [1, 1]} : vector<9x256xf32> to vector<1x256xf32>
    %84 = vector.broadcast %83 : vector<1x256xf32> to vector<4x256xf32>
    %85 = arith.mulf %82, %84 : vector<4x256xf32>
    %86 = vector.extract_strided_slice %2 {offsets = [4, 0], sizes = [1, 256], strides = [1, 1]} : vector<9x256xf32> to vector<1x256xf32>
    %87 = vector.broadcast %86 : vector<1x256xf32> to vector<4x256xf32>
    %88 = arith.mulf %61, %87 : vector<4x256xf32>
    %89 = vector.extract_strided_slice %61 {offsets = [0, 1], sizes = [4, 255], strides = [1, 1]} : vector<4x256xf32> to vector<4x255xf32>
    %90 = vector.extract_strided_slice %61 {offsets = [0, 0], sizes = [4, 1], strides = [1, 1]} : vector<4x256xf32> to vector<4x1xf32>
    %91 = tpu.concatenate %89, %90 in 1 : vector<4x255xf32>, vector<4x1xf32> -> vector<4x256xf32>
    %92 = vector.extract_strided_slice %2 {offsets = [5, 0], sizes = [1, 256], strides = [1, 1]} : vector<9x256xf32> to vector<1x256xf32>
    %93 = vector.broadcast %92 : vector<1x256xf32> to vector<4x256xf32>
    %94 = arith.mulf %91, %93 : vector<4x256xf32>
    %95 = vector.extract_strided_slice %61 {offsets = [0, 15], sizes = [4, 241], strides = [1, 1]} : vector<4x256xf32> to vector<4x241xf32>
    %96 = vector.extract_strided_slice %61 {offsets = [0, 0], sizes = [4, 15], strides = [1, 1]} : vector<4x256xf32> to vector<4x15xf32>
    %97 = tpu.concatenate %95, %96 in 1 : vector<4x241xf32>, vector<4x15xf32> -> vector<4x256xf32>
    %98 = vector.extract_strided_slice %2 {offsets = [6, 0], sizes = [1, 256], strides = [1, 1]} : vector<9x256xf32> to vector<1x256xf32>
    %99 = vector.broadcast %98 : vector<1x256xf32> to vector<4x256xf32>
    %100 = arith.mulf %97, %99 : vector<4x256xf32>
    %101 = vector.extract_strided_slice %61 {offsets = [0, 16], sizes = [4, 240], strides = [1, 1]} : vector<4x256xf32> to vector<4x240xf32>
    %102 = vector.extract_strided_slice %61 {offsets = [0, 0], sizes = [4, 16], strides = [1, 1]} : vector<4x256xf32> to vector<4x16xf32>
    %103 = tpu.concatenate %101, %102 in 1 : vector<4x240xf32>, vector<4x16xf32> -> vector<4x256xf32>
    %104 = vector.extract_strided_slice %2 {offsets = [7, 0], sizes = [1, 256], strides = [1, 1]} : vector<9x256xf32> to vector<1x256xf32>
    %105 = vector.broadcast %104 : vector<1x256xf32> to vector<4x256xf32>
    %106 = arith.mulf %103, %105 : vector<4x256xf32>
    %107 = vector.extract_strided_slice %61 {offsets = [0, 17], sizes = [4, 239], strides = [1, 1]} : vector<4x256xf32> to vector<4x239xf32>
    %108 = vector.extract_strided_slice %61 {offsets = [0, 0], sizes = [4, 17], strides = [1, 1]} : vector<4x256xf32> to vector<4x17xf32>
    %109 = tpu.concatenate %107, %108 in 1 : vector<4x239xf32>, vector<4x17xf32> -> vector<4x256xf32>
    %110 = vector.extract_strided_slice %2 {offsets = [8, 0], sizes = [1, 256], strides = [1, 1]} : vector<9x256xf32> to vector<1x256xf32>
    %111 = vector.broadcast %110 : vector<1x256xf32> to vector<4x256xf32>
    %112 = arith.mulf %109, %111 : vector<4x256xf32>
    %113 = tpu.concatenate %67, %73, %79, %85, %88, %94, %100, %106, %112 in 0 : vector<4x256xf32>, vector<4x256xf32>, vector<4x256xf32>, vector<4x256xf32>, vector<4x256xf32>, vector<4x256xf32>, vector<4x256xf32>, vector<4x256xf32>, vector<4x256xf32> -> vector<36x256xf32>
    %cst_11 = arith.constant dense<0.000000e+00> : vector<4x256xf32>
    %114 = tpu.matmul %6, %113, %cst_11 {dimension_numbers = #tpu.dot_dimension_numbers<[1], [0], [0], [1], [0, 0, 1, 1], [], []>} : vector<4x36xf32>, vector<36x256xf32>, vector<4x256xf32> -> vector<4x256xf32>
    %115 = arith.addf %1, %114 : vector<4x256xf32>
    %c1 = arith.constant 1 : index
    %c0_12 = arith.constant 0 : index
    %c0_13 = arith.constant 0 : index
    %116 = vector.load %arg2[%c1, %c0_12, %c0_13] : memref<2x4x36xf32, #tpu.memory_space<vmem>>, vector<1x4x36xf32>
    %117 = vector.shape_cast %116 : vector<1x4x36xf32> to vector<4x36xf32>
    %c1_14 = arith.constant 1 : index
    %c0_15 = arith.constant 0 : index
    %c0_16 = arith.constant 0 : index
    %118 = vector.load %arg3[%c1_14, %c0_15, %c0_16] : memref<2x4x36xf32, #tpu.memory_space<vmem>>, vector<1x4x36xf32>
    %119 = vector.shape_cast %118 : vector<1x4x36xf32> to vector<4x36xf32>
    %120 = vector.extract_strided_slice %115 {offsets = [0, 239], sizes = [4, 17], strides = [1, 1]} : vector<4x256xf32> to vector<4x17xf32>
    %121 = vector.extract_strided_slice %115 {offsets = [0, 0], sizes = [4, 239], strides = [1, 1]} : vector<4x256xf32> to vector<4x239xf32>
    %122 = tpu.concatenate %120, %121 in 1 : vector<4x17xf32>, vector<4x239xf32> -> vector<4x256xf32>
    %123 = vector.extract_strided_slice %2 {offsets = [0, 0], sizes = [1, 256], strides = [1, 1]} : vector<9x256xf32> to vector<1x256xf32>
    %124 = vector.broadcast %123 : vector<1x256xf32> to vector<4x256xf32>
    %125 = arith.mulf %122, %124 : vector<4x256xf32>
    %126 = vector.extract_strided_slice %115 {offsets = [0, 240], sizes = [4, 16], strides = [1, 1]} : vector<4x256xf32> to vector<4x16xf32>
    %127 = vector.extract_strided_slice %115 {offsets = [0, 0], sizes = [4, 240], strides = [1, 1]} : vector<4x256xf32> to vector<4x240xf32>
    %128 = tpu.concatenate %126, %127 in 1 : vector<4x16xf32>, vector<4x240xf32> -> vector<4x256xf32>
    %129 = vector.extract_strided_slice %2 {offsets = [1, 0], sizes = [1, 256], strides = [1, 1]} : vector<9x256xf32> to vector<1x256xf32>
    %130 = vector.broadcast %129 : vector<1x256xf32> to vector<4x256xf32>
    %131 = arith.mulf %128, %130 : vector<4x256xf32>
    %132 = vector.extract_strided_slice %115 {offsets = [0, 241], sizes = [4, 15], strides = [1, 1]} : vector<4x256xf32> to vector<4x15xf32>
    %133 = vector.extract_strided_slice %115 {offsets = [0, 0], sizes = [4, 241], strides = [1, 1]} : vector<4x256xf32> to vector<4x241xf32>
    %134 = tpu.concatenate %132, %133 in 1 : vector<4x15xf32>, vector<4x241xf32> -> vector<4x256xf32>
    %135 = vector.extract_strided_slice %2 {offsets = [2, 0], sizes = [1, 256], strides = [1, 1]} : vector<9x256xf32> to vector<1x256xf32>
    %136 = vector.broadcast %135 : vector<1x256xf32> to vector<4x256xf32>
    %137 = arith.mulf %134, %136 : vector<4x256xf32>
    %138 = vector.extract_strided_slice %115 {offsets = [0, 255], sizes = [4, 1], strides = [1, 1]} : vector<4x256xf32> to vector<4x1xf32>
    %139 = vector.extract_strided_slice %115 {offsets = [0, 0], sizes = [4, 255], strides = [1, 1]} : vector<4x256xf32> to vector<4x255xf32>
    %140 = tpu.concatenate %138, %139 in 1 : vector<4x1xf32>, vector<4x255xf32> -> vector<4x256xf32>
    %141 = vector.extract_strided_slice %2 {offsets = [3, 0], sizes = [1, 256], strides = [1, 1]} : vector<9x256xf32> to vector<1x256xf32>
    %142 = vector.broadcast %141 : vector<1x256xf32> to vector<4x256xf32>
    %143 = arith.mulf %140, %142 : vector<4x256xf32>
    %144 = vector.extract_strided_slice %2 {offsets = [4, 0], sizes = [1, 256], strides = [1, 1]} : vector<9x256xf32> to vector<1x256xf32>
    %145 = vector.broadcast %144 : vector<1x256xf32> to vector<4x256xf32>
    %146 = arith.mulf %115, %145 : vector<4x256xf32>
    %147 = vector.extract_strided_slice %115 {offsets = [0, 1], sizes = [4, 255], strides = [1, 1]} : vector<4x256xf32> to vector<4x255xf32>
    %148 = vector.extract_strided_slice %115 {offsets = [0, 0], sizes = [4, 1], strides = [1, 1]} : vector<4x256xf32> to vector<4x1xf32>
    %149 = tpu.concatenate %147, %148 in 1 : vector<4x255xf32>, vector<4x1xf32> -> vector<4x256xf32>
    %150 = vector.extract_strided_slice %2 {offsets = [5, 0], sizes = [1, 256], strides = [1, 1]} : vector<9x256xf32> to vector<1x256xf32>
    %151 = vector.broadcast %150 : vector<1x256xf32> to vector<4x256xf32>
    %152 = arith.mulf %149, %151 : vector<4x256xf32>
    %153 = vector.extract_strided_slice %115 {offsets = [0, 15], sizes = [4, 241], strides = [1, 1]} : vector<4x256xf32> to vector<4x241xf32>
    %154 = vector.extract_strided_slice %115 {offsets = [0, 0], sizes = [4, 15], strides = [1, 1]} : vector<4x256xf32> to vector<4x15xf32>
    %155 = tpu.concatenate %153, %154 in 1 : vector<4x241xf32>, vector<4x15xf32> -> vector<4x256xf32>
    %156 = vector.extract_strided_slice %2 {offsets = [6, 0], sizes = [1, 256], strides = [1, 1]} : vector<9x256xf32> to vector<1x256xf32>
    %157 = vector.broadcast %156 : vector<1x256xf32> to vector<4x256xf32>
    %158 = arith.mulf %155, %157 : vector<4x256xf32>
    %159 = vector.extract_strided_slice %115 {offsets = [0, 16], sizes = [4, 240], strides = [1, 1]} : vector<4x256xf32> to vector<4x240xf32>
    %160 = vector.extract_strided_slice %115 {offsets = [0, 0], sizes = [4, 16], strides = [1, 1]} : vector<4x256xf32> to vector<4x16xf32>
    %161 = tpu.concatenate %159, %160 in 1 : vector<4x240xf32>, vector<4x16xf32> -> vector<4x256xf32>
    %162 = vector.extract_strided_slice %2 {offsets = [7, 0], sizes = [1, 256], strides = [1, 1]} : vector<9x256xf32> to vector<1x256xf32>
    %163 = vector.broadcast %162 : vector<1x256xf32> to vector<4x256xf32>
    %164 = arith.mulf %161, %163 : vector<4x256xf32>
    %165 = vector.extract_strided_slice %115 {offsets = [0, 17], sizes = [4, 239], strides = [1, 1]} : vector<4x256xf32> to vector<4x239xf32>
    %166 = vector.extract_strided_slice %115 {offsets = [0, 0], sizes = [4, 17], strides = [1, 1]} : vector<4x256xf32> to vector<4x17xf32>
    %167 = tpu.concatenate %165, %166 in 1 : vector<4x239xf32>, vector<4x17xf32> -> vector<4x256xf32>
    %168 = vector.extract_strided_slice %2 {offsets = [8, 0], sizes = [1, 256], strides = [1, 1]} : vector<9x256xf32> to vector<1x256xf32>
    %169 = vector.broadcast %168 : vector<1x256xf32> to vector<4x256xf32>
    %170 = arith.mulf %167, %169 : vector<4x256xf32>
    %171 = tpu.concatenate %125, %131, %137, %143, %146, %152, %158, %164, %170 in 0 : vector<4x256xf32>, vector<4x256xf32>, vector<4x256xf32>, vector<4x256xf32>, vector<4x256xf32>, vector<4x256xf32>, vector<4x256xf32>, vector<4x256xf32>, vector<4x256xf32> -> vector<36x256xf32>
    %cst_17 = arith.constant dense<0.000000e+00> : vector<4x256xf32>
    %172 = tpu.matmul %117, %171, %cst_17 {dimension_numbers = #tpu.dot_dimension_numbers<[1], [0], [0], [1], [0, 0, 1, 1], [], []>} : vector<4x36xf32>, vector<36x256xf32>, vector<4x256xf32> -> vector<4x256xf32>
    %cst_18 = arith.constant 0.000000e+00 : f32
    %173 = vector.broadcast %cst_18 : f32 to vector<4x256xf32>
    %174 = arith.maximumf %172, %173 : vector<4x256xf32>
    %175 = vector.extract_strided_slice %174 {offsets = [0, 239], sizes = [4, 17], strides = [1, 1]} : vector<4x256xf32> to vector<4x17xf32>
    %176 = vector.extract_strided_slice %174 {offsets = [0, 0], sizes = [4, 239], strides = [1, 1]} : vector<4x256xf32> to vector<4x239xf32>
    %177 = tpu.concatenate %175, %176 in 1 : vector<4x17xf32>, vector<4x239xf32> -> vector<4x256xf32>
    %178 = vector.extract_strided_slice %2 {offsets = [0, 0], sizes = [1, 256], strides = [1, 1]} : vector<9x256xf32> to vector<1x256xf32>
    %179 = vector.broadcast %178 : vector<1x256xf32> to vector<4x256xf32>
    %180 = arith.mulf %177, %179 : vector<4x256xf32>
    %181 = vector.extract_strided_slice %174 {offsets = [0, 240], sizes = [4, 16], strides = [1, 1]} : vector<4x256xf32> to vector<4x16xf32>
    %182 = vector.extract_strided_slice %174 {offsets = [0, 0], sizes = [4, 240], strides = [1, 1]} : vector<4x256xf32> to vector<4x240xf32>
    %183 = tpu.concatenate %181, %182 in 1 : vector<4x16xf32>, vector<4x240xf32> -> vector<4x256xf32>
    %184 = vector.extract_strided_slice %2 {offsets = [1, 0], sizes = [1, 256], strides = [1, 1]} : vector<9x256xf32> to vector<1x256xf32>
    %185 = vector.broadcast %184 : vector<1x256xf32> to vector<4x256xf32>
    %186 = arith.mulf %183, %185 : vector<4x256xf32>
    %187 = vector.extract_strided_slice %174 {offsets = [0, 241], sizes = [4, 15], strides = [1, 1]} : vector<4x256xf32> to vector<4x15xf32>
    %188 = vector.extract_strided_slice %174 {offsets = [0, 0], sizes = [4, 241], strides = [1, 1]} : vector<4x256xf32> to vector<4x241xf32>
    %189 = tpu.concatenate %187, %188 in 1 : vector<4x15xf32>, vector<4x241xf32> -> vector<4x256xf32>
    %190 = vector.extract_strided_slice %2 {offsets = [2, 0], sizes = [1, 256], strides = [1, 1]} : vector<9x256xf32> to vector<1x256xf32>
    %191 = vector.broadcast %190 : vector<1x256xf32> to vector<4x256xf32>
    %192 = arith.mulf %189, %191 : vector<4x256xf32>
    %193 = vector.extract_strided_slice %174 {offsets = [0, 255], sizes = [4, 1], strides = [1, 1]} : vector<4x256xf32> to vector<4x1xf32>
    %194 = vector.extract_strided_slice %174 {offsets = [0, 0], sizes = [4, 255], strides = [1, 1]} : vector<4x256xf32> to vector<4x255xf32>
    %195 = tpu.concatenate %193, %194 in 1 : vector<4x1xf32>, vector<4x255xf32> -> vector<4x256xf32>
    %196 = vector.extract_strided_slice %2 {offsets = [3, 0], sizes = [1, 256], strides = [1, 1]} : vector<9x256xf32> to vector<1x256xf32>
    %197 = vector.broadcast %196 : vector<1x256xf32> to vector<4x256xf32>
    %198 = arith.mulf %195, %197 : vector<4x256xf32>
    %199 = vector.extract_strided_slice %2 {offsets = [4, 0], sizes = [1, 256], strides = [1, 1]} : vector<9x256xf32> to vector<1x256xf32>
    %200 = vector.broadcast %199 : vector<1x256xf32> to vector<4x256xf32>
    %201 = arith.mulf %174, %200 : vector<4x256xf32>
    %202 = vector.extract_strided_slice %174 {offsets = [0, 1], sizes = [4, 255], strides = [1, 1]} : vector<4x256xf32> to vector<4x255xf32>
    %203 = vector.extract_strided_slice %174 {offsets = [0, 0], sizes = [4, 1], strides = [1, 1]} : vector<4x256xf32> to vector<4x1xf32>
    %204 = tpu.concatenate %202, %203 in 1 : vector<4x255xf32>, vector<4x1xf32> -> vector<4x256xf32>
    %205 = vector.extract_strided_slice %2 {offsets = [5, 0], sizes = [1, 256], strides = [1, 1]} : vector<9x256xf32> to vector<1x256xf32>
    %206 = vector.broadcast %205 : vector<1x256xf32> to vector<4x256xf32>
    %207 = arith.mulf %204, %206 : vector<4x256xf32>
    %208 = vector.extract_strided_slice %174 {offsets = [0, 15], sizes = [4, 241], strides = [1, 1]} : vector<4x256xf32> to vector<4x241xf32>
    %209 = vector.extract_strided_slice %174 {offsets = [0, 0], sizes = [4, 15], strides = [1, 1]} : vector<4x256xf32> to vector<4x15xf32>
    %210 = tpu.concatenate %208, %209 in 1 : vector<4x241xf32>, vector<4x15xf32> -> vector<4x256xf32>
    %211 = vector.extract_strided_slice %2 {offsets = [6, 0], sizes = [1, 256], strides = [1, 1]} : vector<9x256xf32> to vector<1x256xf32>
    %212 = vector.broadcast %211 : vector<1x256xf32> to vector<4x256xf32>
    %213 = arith.mulf %210, %212 : vector<4x256xf32>
    %214 = vector.extract_strided_slice %174 {offsets = [0, 16], sizes = [4, 240], strides = [1, 1]} : vector<4x256xf32> to vector<4x240xf32>
    %215 = vector.extract_strided_slice %174 {offsets = [0, 0], sizes = [4, 16], strides = [1, 1]} : vector<4x256xf32> to vector<4x16xf32>
    %216 = tpu.concatenate %214, %215 in 1 : vector<4x240xf32>, vector<4x16xf32> -> vector<4x256xf32>
    %217 = vector.extract_strided_slice %2 {offsets = [7, 0], sizes = [1, 256], strides = [1, 1]} : vector<9x256xf32> to vector<1x256xf32>
    %218 = vector.broadcast %217 : vector<1x256xf32> to vector<4x256xf32>
    %219 = arith.mulf %216, %218 : vector<4x256xf32>
    %220 = vector.extract_strided_slice %174 {offsets = [0, 17], sizes = [4, 239], strides = [1, 1]} : vector<4x256xf32> to vector<4x239xf32>
    %221 = vector.extract_strided_slice %174 {offsets = [0, 0], sizes = [4, 17], strides = [1, 1]} : vector<4x256xf32> to vector<4x17xf32>
    %222 = tpu.concatenate %220, %221 in 1 : vector<4x239xf32>, vector<4x17xf32> -> vector<4x256xf32>
    %223 = vector.extract_strided_slice %2 {offsets = [8, 0], sizes = [1, 256], strides = [1, 1]} : vector<9x256xf32> to vector<1x256xf32>
    %224 = vector.broadcast %223 : vector<1x256xf32> to vector<4x256xf32>
    %225 = arith.mulf %222, %224 : vector<4x256xf32>
    %226 = tpu.concatenate %180, %186, %192, %198, %201, %207, %213, %219, %225 in 0 : vector<4x256xf32>, vector<4x256xf32>, vector<4x256xf32>, vector<4x256xf32>, vector<4x256xf32>, vector<4x256xf32>, vector<4x256xf32>, vector<4x256xf32>, vector<4x256xf32> -> vector<36x256xf32>
    %cst_19 = arith.constant dense<0.000000e+00> : vector<4x256xf32>
    %227 = tpu.matmul %119, %226, %cst_19 {dimension_numbers = #tpu.dot_dimension_numbers<[1], [0], [0], [1], [0, 0, 1, 1], [], []>} : vector<4x36xf32>, vector<36x256xf32>, vector<4x256xf32> -> vector<4x256xf32>
    %228 = arith.addf %115, %227 : vector<4x256xf32>
    %c0_20 = arith.constant 0 : index
    %c0_21 = arith.constant 0 : index
    %c0_22 = arith.constant 0 : index
    %229 = vector.load %arg5[%c0_20, %c0_21, %c0_22] : memref<1x4x256xf32, #tpu.memory_space<vmem>>, vector<1x4x256xf32>
    %230 = vector.shape_cast %229 : vector<1x4x256xf32> to vector<4x256xf32>
    %231 = vector.shape_cast %228 : vector<4x256xf32> to vector<1x4x256xf32>
    tpu.vector_store %arg5[%c0_20, %c0_21, %c0_22], %231 {strides = array<i32>} : memref<1x4x256xf32, #tpu.memory_space<vmem>>, vector<1x4x256xf32>,
    return
  }
  func.func @transform_0(%arg0: i32) -> (i32, i32, i32) {
    %c0_i32 = arith.constant 0 : i32
    %c0_i32_0 = arith.constant 0 : i32
    %c0_i32_1 = arith.constant 0 : i32
    return %arg0, %c0_i32, %c0_i32_0 : i32, i32, i32
  }
  func.func @transform_1(%arg0: i32) -> (i32, i32, i32) {
    %c0_i32 = arith.constant 0 : i32
    %c0_i32_0 = arith.constant 0 : i32
    %c0_i32_1 = arith.constant 0 : i32
    %c0_i32_2 = arith.constant 0 : i32
    return %c0_i32, %c0_i32_0, %c0_i32_1 : i32, i32, i32
  }
  func.func @transform_2(%arg0: i32) -> (i32, i32, i32) {
    %c0_i32 = arith.constant 0 : i32
    %c0_i32_0 = arith.constant 0 : i32
    %c0_i32_1 = arith.constant 0 : i32
    %c0_i32_2 = arith.constant 0 : i32
    return %c0_i32, %c0_i32_0, %c0_i32_1 : i32, i32, i32
  }
  func.func @transform_3(%arg0: i32) -> (i32, i32) {
    %c0_i32 = arith.constant 0 : i32
    %c0_i32_0 = arith.constant 0 : i32
    %c0_i32_1 = arith.constant 0 : i32
    return %c0_i32, %c0_i32_0 : i32, i32
  }
  func.func @transform_4(%arg0: i32) -> (i32, i32, i32) {
    %c0_i32 = arith.constant 0 : i32
    %c0_i32_0 = arith.constant 0 : i32
    %c0_i32_1 = arith.constant 0 : i32
    return %arg0, %c0_i32, %c0_i32_0 : i32, i32, i32
  }
}

</mosaic_0001>

<bundles_post_ra>
// kernel: tpu_custom_call.1
= control target key start
LH: loop header
LB: loop body
LE: loop exit
PB: predicated region body
PF: predicated region fallthrough
CT: control target
= control target key end

     0   :  { %9 = vsyncpa [#allocation3], 0  ;;  %s2298_s0 = inlined_call_operand.hbm [shape: f32[2,4,256], index: 0, kind: input, shape index: {}]   ;;  %s2299_s1 = inlined_call_operand.hbm [shape: f32[2,4,36], index: 1, kind: input, shape index: {}]   ;;  %s2300_s2 = inlined_call_operand.hbm [shape: f32[2,4,36], index: 2, kind: input, shape index: {}]   ;;  %s2301_s3 = inlined_call_operand.hbm [shape: f32[9,256], index: 3, kind: input, shape index: {}]   ;;  %s2302_s4 = inlined_call_operand.hbm [shape: f32[2,4,256], index: 4, kind: output, shape index: {}]  }
   0x1   :  { %11 = vsyncpa [#allocation3 + $0x1], 0 }
   0x2   :  { %12 = vsyncpa [#allocation6], 0 }
   0x3   :  { %13 = vsyncpa [#allocation9], 0 }
   0x4   :  { %14 = vsyncpa [#allocation4], 0 }
   0x5   :  { %16 = vsyncpa [#allocation4 + $0x1], 0  ;;  %s1696_s15 = smov 0   ;;  %s1698_s16 = smov 0  }
   0x6   :  { %s1700_s17 = smov 0   ;;  %s1702_s18 = smov 0  }
   0x7 LB: > { %s1717_s19 = sadd.s32 4294967295, %s1651_s18   ;;  %s1304_s20 = sadd.s32 4294967294, %s1651_s18   ;;  %s1651_s18 = sphi %s1702_s18, %s2325_s18   ;;  %s1647_s17 = sphi %s1700_s17, %s2324_s17   ;;  %s1643_s16 = sphi %s1698_s16, %s2323_s16   ;;  %s1639_s15 = sphi %s1696_s15, %s2322_s15  }
   0x8   : > { %p42_p0 = scmp.ne.s32.totalorder %s1643_s16, %s1639_s15  ;;  %p2303_p1 = scmp.eq.s32.totalorder %s1717_s19, 0 }
   0x9   : > { %p135_p3 = scmp.eq.s32.totalorder %s1304_s20, 1  ;;  %p1305_p5 = scmp.ge.s32.totalorder %s1651_s18, 1 }
   0xa   : > { %p1726_p4 = por %p2303_p1, %p42_p0  ;;  %p142_p7 = scmp.lt.s32.totalorder %s1651_s18, 3 }
   0xb   : > { %p1731_p6 = por %p135_p3, %p42_p0  ;;  %s1653_s24 = smov [#allocation5]  }
   0xc   : > { %s2306_s21 = scalar_select %p1726_p4, 1, 0 }
   0xd   : > { %s2307_s22 = scalar_select %p1731_p6, 1, 0 }
   0xe   : > { %p1736_p8 = pnand %p1305_p5, %p142_p7  ;;  %s154_s25 = sshll.u32 %s1653_s24, 4  ;;  %s1740_s25 = int_to_ptr.vmem [resolvable:$true] %s154_s25 }
   0xf   : > { %s1654_s27 = smov [#allocation7]   ;;  %s1655_s29 = smov [#allocation8]  }
  0x10   : > { %s2308_s23 = scalar_select %p1736_p8, 1, 0 }
  0x11   : > { %p1388_p9 = pneg %p1736_p8  ;;  %s167_s28 = sshll.u32 %s1654_s27, 4  ;;  %s1751_s28 = int_to_ptr.vmem [resolvable:$true] %s167_s28 }
  0x12   : > { %s1753_s30 = sshll.u32 %s1655_s29, 4  ;;  %s1463_s7 = scalar_lea.hbm %s2299_s1, 128  ;;  %s181_s30 = int_to_ptr.vmem [resolvable:$true] %s1753_s30 }
  0x13   : > { %p1747_p11 = pnand %p1388_p9, %p2303_p1  ;;  %p1464_p12 = scmp.ne.s32.totalorder %s2299_s1, %s1463_s7 }
  0x14   : > { %p1470_p5 = scmp.lt.u32.totalorder %s1463_s7, %s2299_s1 }
  0x15   : > { %p1763_p13 = pneg %p1747_p11 }
  0x17   : > { %p1466_p0 = pnand %p1763_p13, %p1464_p12 }
  0x19   : > { %p1467_p3 = pneg %p1466_p0 }
  0x1b   : > { %p1472_p7 = pnand %p1470_p5, %p1467_p3 }
  0x1d   : > { %1475 = shalt.err (!%p1472_p7)
}
  0x1e   : > { %s1476_s13 = scalar_lea.vmem %s1740_s25, 128  ;;  %p1484_p2 = scmp.lt.s32.totalorder %s1740_s25, %s1740_s25 }
  0x1f   : > { %p1477_p9 = scmp.ne.s32.totalorder %s1740_s25, %s1476_s13  ;;  %p1485_p6 = scmp.lt.s32.totalorder %s1476_s13, %s1476_s13 }
  0x21   : > { %p1479_p10 = pnand %p1477_p9, %p1763_p13  ;;  %p1486_p12 = por %p1485_p6, %p1484_p2 }
  0x23   : > { %p1480_p1 = pneg %p1479_p10 }
  0x25   : > { %p1487_p0 = pnand %p1486_p12, %p1480_p1 }
  0x27   : > { %1490 = shalt.err (!%p1487_p0)
}
  0x28   : > { %s1656_s14 = smov 64   ;;  %s1657_s20 = smov 4  }
  0x29   : > { %1391 = dma.hbm_to_vmem [thread:$0]  (!%p1747_p11), %s2299_s1, 128, %s1740_s25, [#allocation6], %s1656_s14, %s1656_s14, %s1657_s20  }
  0x2a   : > { %s1491_s6 = scalar_lea.hbm %s2300_s2, 128 }
  0x2b   : > { %p1492_p2 = scmp.ne.s32.totalorder %s2300_s2, %s1491_s6  ;;  %p1498_p10 = scmp.lt.u32.totalorder %s1491_s6, %s2300_s2 }
  0x2d   : > { %p1494_p1 = pnand %p1492_p2, %p1763_p13 }
  0x2f   : > { %p1495_p6 = pneg %p1494_p1 }
  0x31   : > { %p1500_p3 = pnand %p1498_p10, %p1495_p6 }
  0x33   : > { %1503 = shalt.err (!%p1500_p3)
}
  0x34   : > { %s1504_s25 = scalar_lea.vmem %s1751_s28, 128  ;;  %p1512_p12 = scmp.lt.s32.totalorder %s1751_s28, %s1751_s28 }
  0x35   : > { %p1505_p5 = scmp.ne.s32.totalorder %s1751_s28, %s1504_s25  ;;  %p1513_p0 = scmp.lt.s32.totalorder %s1504_s25, %s1504_s25 }
  0x37   : > { %p1507_p7 = pnand %p1505_p5, %p1763_p13  ;;  %p1514_p2 = por %p1513_p0, %p1512_p12 }
  0x39   : > { %p1508_p9 = pneg %p1507_p7 }
  0x3b   : > { %p1515_p1 = pnand %p1514_p2, %p1508_p9 }
  0x3d   : > { %1518 = shalt.err (!%p1515_p1)
}
  0x3e   : > { %1394 = dma.hbm_to_vmem [thread:$0]  (!%p1747_p11), %s2300_s2, 128, %s1751_s28, [#allocation6], %s1656_s14, %s1656_s14, %s1657_s20  }
  0x3f   : > { %s1519_s29 = scalar_lea.hbm %s2301_s3, 512 }
  0x40   : > { %p1520_p6 = scmp.ne.s32.totalorder %s2301_s3, %s1519_s29  ;;  %p1526_p5 = scmp.lt.u32.totalorder %s1519_s29, %s2301_s3 }
  0x42   : > { %p1522_p10 = pnand %p1520_p6, %p1763_p13 }
  0x44   : > { %p1523_p3 = pneg %p1522_p10 }
  0x46   : > { %p1528_p7 = pnand %p1526_p5, %p1523_p3 }
  0x48   : > { %1531 = shalt.err (!%p1528_p7)
}
  0x49   : > { %s1532_s9 = scalar_lea.vmem %s181_s30, 512  ;;  %p1540_p2 = scmp.lt.s32.totalorder %s181_s30, %s181_s30 }
  0x4a   : > { %p1533_p9 = scmp.ne.s32.totalorder %s181_s30, %s1532_s9  ;;  %p1541_p1 = scmp.lt.s32.totalorder %s1532_s9, %s1532_s9 }
  0x4c   : > { %p1535_p12 = pnand %p1533_p9, %p1763_p13  ;;  %p1542_p4 = por %p1541_p1, %p1540_p2 }
  0x4e   : > { %p1536_p0 = pneg %p1535_p12 }
  0x50   : > { %p1543_p8 = pnand %p1542_p4, %p1536_p0 }
  0x52   : > { %1546 = shalt.err (!%p1543_p8)
}
  0x53   : > { %s1658_s28 = smov 256   ;;  %s1659_s10 = smov 16  }
  0x54   : > { %1397 = dma.hbm_to_vmem [thread:$0]  (!%p1747_p11), %s2301_s3, 512, %s181_s30, [#allocation9], %s1658_s28, %s1658_s28, %s1659_s10  }
  0x55   : > { %s1827_s11 = sadd.s32 1, %s1651_s18   ;;  %s29_s12 = sadd.s32 1, %s1647_s17 }
  0x56   : > { %s26_s25 = ssub.s32 %s1651_s18, %s1827_s11  ;;  %p36_p8 = scmp.ne.s32.totalorder %s1647_s17, %s1643_s16 }
  0x57   : > { %p27_p4 = scmp.eq.s32.totalorder %s26_s25, 0  ;;  %p37_p13 = scmp.eq.s32.totalorder %s1651_s18, 0 }
  0x58   : > { %p1409_p6 = scmp.lt.s32.totalorder %s1651_s18, 2  ;;  %p2311_p3 = scmp.eq.s32.totalorder %s1717_s19, 1 }
  0x59   : > { %s1837_s13 = scalar_select %p27_p4, %s1647_s17, %s29_s12  }
  0x5a   : > { %p38_p10 = por %p37_p13, %p36_p8  ;;  %p1841_p5 = por %p2311_p3, %p36_p8 }
  0x5b   : > { %s194_s26 = sand.u32 1, %s1647_s17   ;;  %s1338_s27 = sshll.u32 %s1651_s18, 7 }
  0x5c   : > { %s1310_s30 = sshll.u32 %s194_s26, 3  ;;  %s1850_s6 = scalar_lea.hbm %s2298_s0, %s1338_s27 }
  0x5d   : > { %s198_s7 = scalar_lea.vmem [#allocation2], %s1310_s30  ;;  %p1852_p11 = pnand %p1409_p6, %p38_p10 }
  0x5e   : > { %s206_s8 = sshll.u32 %s198_s7, 4  ;;  %s195_s28 = scalar_lea.sflag [#allocation3], %s194_s26  ;;  %s1856_s8 = int_to_ptr.vmem [resolvable:$true] %s206_s8 }
  0x5f   : > { %s1547_s10 = scalar_lea.hbm %s1850_s6, 128  ;;  %p1549_p9 = pneg %p1852_p11 }
  0x60   : > { %p1548_p7 = scmp.ne.s32.totalorder %s1850_s6, %s1547_s10  ;;  %s1552_s25 = scalar_lea.hbm %s2298_s0, 256 }
  0x61   : > { %p1553_p2 = scmp.lt.u32.totalorder %s1850_s6, %s2298_s0  ;;  %p1554_p1 = scmp.lt.u32.totalorder %s1552_s25, %s1547_s10 }
  0x62   : > { %p1550_p12 = pnand %p1549_p9, %p1548_p7  ;;  %p1556_p8 = scmp.lt.u32.totalorder %s1547_s10, %s1850_s6 }
  0x63   : > { %p1555_p4 = por %p1554_p1, %p1553_p2 }
  0x64   : > { %p1551_p0 = pneg %p1550_p12 }
  0x65   : > { %p1557_p13 = por %p1556_p8, %p1555_p4 }
  0x67   : > { %p1558_p6 = pnand %p1557_p13, %p1551_p0 }
  0x69   : > { %1561 = shalt.err (!%p1558_p6)
}
  0x6a   : > { %s1562_s26 = scalar_lea.vmem %s1856_s8, 128  ;;  %s1660_s30 = smov [#allocation2]  }
  0x6b   : > { %p1563_p10 = scmp.ne.s32.totalorder %s1856_s8, %s1562_s26  ;;  %s1567_s29 = sshll.u32 %s1660_s30, 4  ;;  %s1568_s29 = int_to_ptr.vmem [resolvable:$false] %s1567_s29 }
  0x6c   : > { %s1569_s5 = scalar_lea.vmem %s1568_s29, 256  ;;  %p1570_p12 = scmp.lt.s32.totalorder %s1856_s8, %s1568_s29 }
  0x6d   : > { %p1565_p3 = pnand %p1563_p10, %p1549_p9  ;;  %p1571_p2 = scmp.lt.s32.totalorder %s1569_s5, %s1562_s26 }
  0x6f   : > { %p1566_p7 = pneg %p1565_p3  ;;  %p1572_p1 = por %p1571_p2, %p1570_p12 }
  0x71   : > { %p1573_p4 = pnand %p1572_p1, %p1566_p7 }
  0x73   : > { %1576 = shalt.err (!%p1573_p4)
}
  0x74   : > { %1401 = dma.hbm_to_vmem [thread:$0]  (!%p1852_p11), %s1850_s6, 128, %s1856_s8, %s195_s28  }
  0x75   : > { %p2314_p0 = scmp.ne.s32.totalorder %s2308_s23, 0 }
  0x76   : > { %s1886_s7 = sand.u32 (!%p2314_p0), 1, %s1643_s16   ;;  %p2315_p9 = scmp.ne.s32.totalorder (!%p2314_p0), %s2306_s21, 0 }
  0x77   : > { %215 = sbr.rel (%p2314_p0) target bundleno = 1615 (0x64f), region = 36  ;;  %s1314_s10 = sshll.u32 (!%p2314_p0), %s1886_s7, 3 }
  0x78   : > { %s218_s14 = scalar_lea.sflag (!%p2314_p0), [#allocation3], %s1886_s7  ;;  %s221_s20 = scalar_lea.vmem (!%p2314_p0), [#allocation2], %s1314_s10 }
  0x7e   : > { %1622 = dma.done.wait (%p2315_p9), %s218_s14, 128  }
  0x7f   : > { %1624 = vsyncadd (%p2315_p9), %s218_s14, 4294967168  ;;  %p2316_p11 = scmp.eq.s32.totalorder %s1717_s19, 0 }
  0x81   : > { %1626 = dma.done.wait (%p2316_p11), [#allocation6], 256   ;;  %p2317_p8 = pmov %p2316_p11 }
  0x83   : > { %1628 = vsyncadd (%p2317_p8), [#allocation6], 4294967040  ;;  %p2318_p13 = pmov %p2317_p8 }
  0x84   : > { %p2319_p6 = pmov %p2317_p8 }
  0x85   : > { %1630 = dma.done.wait (%p2318_p13), [#allocation9], 512  }
  0x86   : > { %1632 = vsyncadd (%p2319_p6), [#allocation9], 4294966784  ;;  %v1904_v0 = vld [vmem:[%s221_s20] sm:$0xff]  ;;  %s1661_s23 = smov 1   ;;  %s1662_s21 = smov 16   ;;  %v1667_v2 = vmov 0.0   ;;  %v277_v3 = vlaneseq }
  0x87   : > { %330 = vrot.lane.b32.xlu1 %v1904_v0, %s1661_s23  ;;  %290 = vrot.lane.b32.xlu0 %v1904_v0, %s1662_s21  ;;  %v266_v1 = vcombine.high %v1904_v0, %v1904_v0  ;;  %s1663_s6 = smov 17   ;;  %s1664_s8 = smov 15   ;;  %v1937_v8 = vld [vmem:[#allocation8] sm:$0xff]  ;;  %v1939_v9 = vld [vmem:[#allocation8 + $0x8] sm:$0xff]  ;;  %vm292_vm0 = vcmask 130048   ;;  %vm332_vm1 = vcmask 7168  }
  0x88   : > { %s1665_s9 = smov 127   ;;  %s1666_s28 = smov 112   ;;  %550 = vmatprep.mubr.f32.mxu0 %v1667_v2  ;;  %756 = vmatprep.mubr.f32.mxu1 %v1667_v2  ;;  %v1934_v4 = vshrl.u32 %v277_v3, 7  ;;  %vm272_vm2 = vcmask 138240   ;;  %vm312_vm3 = vcmask 121856   ;;  %vm467_vm4 = vcmask 1043456  }
  0x89   : > { %s1668_s25 = smov 113   ;;  %s1669_s12 = smov 111   ;;  %vm364_vm5 = vcmask 1039360   ;;  %vm404_vm6 = vcmask 916480   ;;  %vm384_vm7 = vcmask 924672   ;;  %vm424_vm8 = vcmask 908288  }
  0x8a   : > { %v299_v7 = vsub.s32 1, %v1934_v4  ;;  %v339_v10 = vsub.s32 3, %v1934_v4  ;;  %v279_v15 = vsub.s32 0, %v1934_v4  ;;  %v319_v20 = vsub.s32 2, %v1934_v4  ;;  %s1339_s27 = sshll.u32 %s1717_s19, 7  ;;  %s257_s26 = scalar_lea.vmem [#allocation10], %s1314_s10 }
  0x8b   : > { %270 = vrot.lane.b32.xlu1 %v1904_v0, %s1663_s6  ;;  %287 = vrot.lane.b32.xlu0 %v266_v1, %s1662_s21  ;;  %v349_v21 = vsub.s32 4, %v1934_v4  ;;  %v372_v36 = vsub.s32 5, %v1934_v4  ;;  %v412_v43 = vsub.s32 7, %v1934_v4  ;;  %vm476_vm9 = vcmask 293888   ;;  %s1205_s30 = sshll.u32 %s257_s26, 4  ;;  %s2254_s14 = scalar_lea.hbm %s2302_s4, %s1339_s27  ;;  %s2256_s30 = int_to_ptr.vmem [resolvable:$true] %s1205_s30 }
  0x8c   : > { %v1943_v12 = vrot.slane %v1937_v8, %v299_v7  ;;  %v1946_v13 = vrot.slane %v1939_v9, %v299_v7  ;;  %v1952_v18 = vrot.slane %v1937_v8, %v339_v10  ;;  %v1955_v19 = vrot.slane %v1939_v9, %v339_v10  ;;  %s1191_s20 = scalar_lea.sflag [#allocation4], %s1886_s7  ;;  %s1670_s19 = smov [#allocation10]  }
  0x8d   : > { %v1962_v25 = vrot.slane %v1937_v8, %v279_v15  ;;  %v1965_v26 = vrot.slane %v1939_v9, %v279_v15  ;;  %v1974_v34 = vrot.slane %v1937_v8, %v319_v20  ;;  %v1977_v35 = vrot.slane %v1939_v9, %v319_v20  ;;  %s1581_s10 = sshll.u32 %s1670_s19, 4  ;;  %s1582_s10 = int_to_ptr.vmem [resolvable:$false] %s1581_s10 }
  0x8e   : > { %v1981_v37 = vrot.slane %v1937_v8, %v349_v21  ;;  %v1984_v38 = vrot.slane %v1939_v9, %v349_v21  ;;  %v1994_v52 = vrot.slane %v1937_v8, %v372_v36  ;;  %v1997_v53 = vrot.slane %v1939_v9, %v372_v36  ;;  %p1584_p12 = scmp.lt.s32.totalorder %s2256_s30, %s1582_s10 }
  0x8f   : > { %327 = vrot.lane.b32.xlu1 %v266_v1, %s1661_s23  ;;  %267 = vrot.lane.b32.xlu0 %v266_v1, %s1663_s6  ;;  %v2010_v3 = vrot.slane %v1937_v8, %v412_v43 }
  0x90   : > { %v2001_v54 = vcombine.low %v1981_v37, %v1984_v38 }
  0x92   : > { %v359_v15 = vmul.f32 %v2001_v54, %v1904_v0 }
  0x93   : > { %310 = vrot.lane.b32.xlu1 %v1904_v0, %s1664_s8  ;;  %307 = vrot.lane.b32.xlu0 %v266_v1, %s1664_s8 }
  0x97   : > { %362 = vrot.lane.b32.xlu1 %v266_v1, %s1665_s9  ;;  %360 = vrot.lane.b32.xlu0 %v1904_v0, %s1665_s9 }
  0x9b   : > { %402 = vrot.lane.b32.xlu1 %v266_v1, %s1666_s28  ;;  %400 = vrot.lane.b32.xlu0 %v1904_v0, %s1666_s28 }
  0x9f   : > { %382 = vrot.lane.b32.xlu1 %v266_v1, %s1668_s25  ;;  %380 = vrot.lane.b32.xlu0 %v1904_v0, %s1668_s25 }
  0xa3   : > { %422 = vrot.lane.b32.xlu1 %v266_v1, %s1669_s12  ;;  %420 = vrot.lane.b32.xlu0 %v1904_v0, %s1669_s12 }
  0xf9   : > { %v331_v5 = vpop.permute.xlu1 %330  ;;  %v291_v6 = vpop.permute.xlu0 %290 }
  0xfd   : > { %v271_v11 = vpop.permute.xlu1 %270  ;;  %v288_v14 = vpop.permute.xlu0 %287 }
  0xfe   : > { %v293_v16 = vsel %vm292_vm0, %v291_v6, %v288_v14  ;;  %v296_v17 = vsel %vm292_vm0, %v288_v14, %v291_v6  ;;  %v392_v6 = vsub.s32 6, %v1934_v4 }
  0xff   : > { %v305_v22 = vmul.f32 %v1943_v12, %v296_v17  ;;  %v306_v23 = vmul.f32 %v1946_v13, %v293_v16 }
 0x100   : > { %v2025_v21 = vrot.slane %v1937_v8, %v392_v6 }
 0x101   : > { %v328_v24 = vpop.permute.xlu1 %327  ;;  %v268_v27 = vpop.permute.xlu0 %267  ;;  %v442_v44 = vrot.slane %v305_v22, 4  ;;  %v443_v45 = vrot.slane %v306_v23, 4  ;;  %v2028_v22 = vrot.slane %v1939_v9, %v392_v6 }
 0x102   : > { %v333_v28 = vsel %vm332_vm1, %v331_v5, %v328_v24  ;;  %v336_v29 = vsel %vm332_vm1, %v328_v24, %v331_v5  ;;  %v273_v30 = vsel %vm272_vm2, %v271_v11, %v268_v27  ;;  %v276_v31 = vsel %vm272_vm2, %v268_v27, %v271_v11 }
 0x103   : > { %v345_v32 = vmul.f32 %v1952_v18, %v336_v29  ;;  %v346_v33 = vmul.f32 %v1955_v19, %v333_v28  ;;  %v285_v39 = vmul.f32 %v1962_v25, %v276_v31  ;;  %v286_v40 = vmul.f32 %v1965_v26, %v273_v30 }
 0x104   : > { %v2013_v5 = vrot.slane %v1939_v9, %v412_v43  ;;  %v453_v29 = vcombine.high %v359_v15, %v359_v15 }
 0x105   : > { %v311_v41 = vpop.permute.xlu1 %310  ;;  %v308_v42 = vpop.permute.xlu0 %307  ;;  %v448_v48 = vrot.slane %v345_v32, 4  ;;  %v449_v49 = vrot.slane %v346_v33, 4  ;;  %v469_v57 = vsel %vm467_vm4, %v286_v40, %v443_v45  ;;  %v468_v59 = vsel %vm467_vm4, %v285_v39, %v442_v44  ;;  %v2034_v39 = vld [vmem:[#allocation8 + $0x18] ss:$0 sm:$0xff] }
 0x106   : > { %v313_v46 = vsel %vm312_vm3, %v311_v41, %v308_v42  ;;  %v316_v47 = vsel %vm312_vm3, %v308_v42, %v311_v41 }
 0x107   : > { %v325_v50 = vmul.f32 %v1974_v34, %v316_v47  ;;  %v326_v51 = vmul.f32 %v1977_v35, %v313_v46  ;;  %v2040_v46 = vld [vmem:[#allocation8 + $0x10] ss:$0 sm:$0xff] }
 0x109   : > { %v363_v55 = vpop.permute.xlu1 %362  ;;  %v361_v56 = vpop.permute.xlu0 %360  ;;  %v471_v58 = vsel %vm467_vm4, %v326_v51, %v449_v49  ;;  %v470_v60 = vsel %vm467_vm4, %v325_v50, %v448_v48 }
 0x10a   : > { %v365_v61 = vsel %vm364_vm5, %v361_v56, %v363_v55  ;;  %v369_v62 = vsel %vm364_vm5, %v363_v55, %v361_v56  ;;  %v1340_v63 = vpack.c.bf16 %v471_v58, %v469_v57  ;;  %v1342_v1 = vpack.c.bf16 %v470_v60, %v468_v59  ;;  %v263_v55 = vld [vmem:[#allocation5] sm:$0xf] }
 0x10b   : > { %v378_v7 = vmul.f32 %v1994_v52, %v365_v61  ;;  %v379_v10 = vmul.f32 %v1997_v53, %v369_v62 }
 0x10c   : > { %1341 = vmatprep.subr.bf16.mxu0 %v1340_v63 }
 0x10d   : > { %v403_v11 = vpop.permute.xlu1 %402  ;;  %1343 = vmatpush1.bf16.msra.mxu0 %v1342_v1  ;;  %v401_v14 = vpop.permute.xlu0 %400  ;;  %v457_v23 = vrot.slane %v378_v7, 4  ;;  %v458_v24 = vrot.slane %v379_v10, 4 }
 0x10e   : > { %v405_v16 = vsel %vm404_vm6, %v401_v14, %v403_v11  ;;  %v409_v17 = vsel %vm404_vm6, %v403_v11, %v401_v14 }
 0x10f   : > { %v418_v20 = vmul.f32 %v2010_v3, %v405_v16  ;;  %v419_v4 = vmul.f32 %v2013_v5, %v409_v17  ;;  %v473_v40 = vsel %vm467_vm4, %v453_v29, %v458_v24  ;;  %v472_v43 = vsel %vm467_vm4, %v359_v15, %v457_v23 }
 0x111   : > { %v383_v27 = vpop.permute.xlu1 %382  ;;  %v381_v28 = vpop.permute.xlu0 %380  ;;  %v463_v32 = vrot.slane %v418_v20, 4  ;;  %v464_v33 = vrot.slane %v419_v4, 4 }
 0x112   : > { %v385_v30 = vsel %vm384_vm7, %v381_v28, %v383_v27  ;;  %v389_v31 = vsel %vm384_vm7, %v383_v27, %v381_v28 }
 0x113   : > { %v398_v36 = vmul.f32 %v2025_v21, %v385_v30  ;;  %v399_v8 = vmul.f32 %v2028_v22, %v389_v31 }
 0x115   : > { %v423_v9 = vpop.permute.xlu1 %422  ;;  %v475_v41 = vsel %vm467_vm4, %v399_v8, %v464_v33  ;;  %v421_v42 = vpop.permute.xlu0 %420  ;;  %v474_v44 = vsel %vm467_vm4, %v398_v36, %v463_v32 }
 0x116   : > { %v1344_v45 = vpack.c.bf16 %v475_v41, %v473_v40  ;;  %v425_v47 = vsel %vm424_vm8, %v421_v42, %v423_v9  ;;  %v429_v48 = vsel %vm424_vm8, %v423_v9, %v421_v42  ;;  %v1346_v49 = vpack.c.bf16 %v474_v44, %v472_v43 }
 0x117   : > { %v439_v50 = vmul.f32 %v2034_v39, %v429_v48  ;;  %v438_v51 = vmul.f32 %v2040_v46, %v425_v47 }
 0x118   : > { %1345 = vmatprep.subr.bf16.mxu0 %v1344_v45 }
 0x119   : > { %1347 = vmatpush1.bf16.msra.mxu0 %v1346_v49 }
 0x11a   : > { %1321 = vmatprep.subr.msk.mxu0 %vm467_vm4, %v439_v50 }
 0x11d   : > { %1322 = vmatpush1.msk.msra.mxu0 %vm467_vm4, %v438_v51 }
 0x11e   : > { %1323 = vmatmul.mubr.msk.f32.vlgmr.msra.gmra.mrb[0].mxu0 %vm476_vm9, %v263_v55 }
 0x11f   : > { %971 = vmatprep.mubr.f32.mxu0 %v1667_v2 }
 0x1f1   : > { %v552_v56 = vpop.f32.mrb[0].mxu0 }
 0x1f2   : > { %v557_v57 = vmax.f32 %v552_v56, 0.0  ;;  %v554_v58 = vpop.f32.mrb[1].mxu0 }
 0x1f3   : > { %v558_v59 = vmax.f32 %v554_v58, 0.0 }
 0x1f4   : > { %607 = vrot.lane.b32.xlu0 %v557_v57, %s1665_s9  ;;  %575 = vrot.lane.b32.xlu1 %v557_v57, %s1662_s21 }
 0x1f8   : > { %629 = vrot.lane.b32.xlu0 %v557_v57, %s1666_s28  ;;  %597 = vrot.lane.b32.xlu1 %v557_v57, %s1661_s23 }
 0x1fc   : > { %564 = vrot.lane.b32.xlu1 %v557_v57, %s1663_s6  ;;  %572 = vrot.lane.b32.xlu0 %v558_v59, %s1662_s21 }
 0x200   : > { %586 = vrot.lane.b32.xlu1 %v557_v57, %s1664_s8  ;;  %594 = vrot.lane.b32.xlu0 %v558_v59, %s1661_s23 }
 0x204   : > { %609 = vrot.lane.b32.xlu1 %v558_v59, %s1665_s9  ;;  %560 = vrot.lane.b32.xlu0 %v558_v59, %s1663_s6 }
 0x208   : > { %631 = vrot.lane.b32.xlu1 %v558_v59, %s1666_s28  ;;  %583 = vrot.lane.b32.xlu0 %v558_v59, %s1664_s8 }
 0x20c   : > { %620 = vrot.lane.b32.xlu1 %v558_v59, %s1668_s25  ;;  %618 = vrot.lane.b32.xlu0 %v557_v57, %s1668_s25 }
 0x210   : > { %642 = vrot.lane.b32.xlu1 %v558_v59, %s1669_s12  ;;  %640 = vrot.lane.b32.xlu0 %v557_v57, %s1669_s12 }
 0x266   : > { %v608_v60 = vpop.permute.xlu0 %607  ;;  %v576_v61 = vpop.permute.xlu1 %575 }
 0x26a   : > { %v630_v62 = vpop.permute.xlu0 %629  ;;  %v598_v63 = vpop.permute.xlu1 %597 }
 0x26e   : > { %v565_v1 = vpop.permute.xlu1 %564  ;;  %v573_v6 = vpop.permute.xlu0 %572 }
 0x26f   : > { %v577_v7 = vsel %vm292_vm0, %v576_v61, %v573_v6  ;;  %v580_v10 = vsel %vm292_vm0, %v573_v6, %v576_v61  ;;  %v606_v61 = vmul.f32 %v558_v59, %v1984_v38 }
 0x270   : > { %v581_v17 = vmul.f32 %v580_v10, %v1943_v12  ;;  %v582_v20 = vmul.f32 %v577_v7, %v1946_v13 }
 0x272   : > { %v587_v11 = vpop.permute.xlu1 %586  ;;  %v595_v14 = vpop.permute.xlu0 %594  ;;  %v653_v32 = vrot.slane %v581_v17, 4  ;;  %v654_v33 = vrot.slane %v582_v20, 4 }
 0x273   : > { %v599_v15 = vsel %vm332_vm1, %v598_v63, %v595_v14  ;;  %v602_v16 = vsel %vm332_vm1, %v595_v14, %v598_v63  ;;  %v605_v63 = vmul.f32 %v557_v57, %v1981_v37 }
 0x274   : > { %v603_v4 = vmul.f32 %v602_v16, %v1952_v18  ;;  %v604_v23 = vmul.f32 %v599_v15, %v1955_v19 }
 0x276   : > { %v610_v24 = vpop.permute.xlu1 %609  ;;  %v561_v27 = vpop.permute.xlu0 %560  ;;  %v659_v9 = vrot.slane %v603_v4, 4  ;;  %v660_v40 = vrot.slane %v604_v23, 4 }
 0x277   : > { %v611_v28 = vsel %vm364_vm5, %v608_v60, %v610_v24  ;;  %v615_v29 = vsel %vm364_vm5, %v610_v24, %v608_v60  ;;  %v566_v30 = vsel %vm272_vm2, %v565_v1, %v561_v27  ;;  %v569_v31 = vsel %vm272_vm2, %v561_v27, %v565_v1 }
 0x278   : > { %v616_v36 = vmul.f32 %v611_v28, %v1994_v52  ;;  %v617_v8 = vmul.f32 %v615_v29, %v1997_v53  ;;  %v570_v41 = vmul.f32 %v569_v31, %v1962_v25  ;;  %v571_v42 = vmul.f32 %v566_v30, %v1965_v26 }
 0x27a   : > { %v632_v43 = vpop.permute.xlu1 %631  ;;  %v584_v44 = vpop.permute.xlu0 %583  ;;  %v665_v58 = vrot.slane %v616_v36, 4  ;;  %v666_v60 = vrot.slane %v617_v8, 4  ;;  %v676_v6 = vsel %vm467_vm4, %v571_v42, %v654_v33  ;;  %v675_v10 = vsel %vm467_vm4, %v570_v41, %v653_v32 }
 0x27b   : > { %v633_v45 = vsel %vm404_vm6, %v630_v62, %v632_v43  ;;  %v637_v47 = vsel %vm404_vm6, %v632_v43, %v630_v62  ;;  %v588_v48 = vsel %vm312_vm3, %v587_v11, %v584_v44  ;;  %v591_v49 = vsel %vm312_vm3, %v584_v44, %v587_v11 }
 0x27c   : > { %v638_v50 = vmul.f32 %v633_v45, %v2010_v3  ;;  %v639_v51 = vmul.f32 %v637_v47, %v2013_v5  ;;  %v592_v55 = vmul.f32 %v591_v49, %v1974_v34  ;;  %v593_v56 = vmul.f32 %v588_v48, %v1977_v35 }
 0x27d   : > { %v680_v27 = vsel %vm467_vm4, %v606_v61, %v666_v60  ;;  %v679_v29 = vsel %vm467_vm4, %v605_v63, %v665_v58 }
 0x27e   : > { %v621_v1 = vpop.permute.xlu1 %620  ;;  %v619_v62 = vpop.permute.xlu0 %618  ;;  %v678_v7 = vsel %vm467_vm4, %v593_v56, %v660_v40  ;;  %v677_v11 = vsel %vm467_vm4, %v592_v55, %v659_v9  ;;  %v671_v20 = vrot.slane %v638_v50, 4  ;;  %v672_v59 = vrot.slane %v639_v51, 4  ;;  %v264_v40 = vld [vmem:[#allocation7] sm:$0xf] }
 0x27f   : > { %v622_v14 = vsel %vm384_vm7, %v619_v62, %v621_v1  ;;  %v626_v15 = vsel %vm384_vm7, %v621_v1, %v619_v62  ;;  %v1348_v16 = vpack.c.bf16 %v678_v7, %v676_v6  ;;  %v1350_v17 = vpack.c.bf16 %v677_v11, %v675_v10 }
 0x280   : > { %v627_v57 = vmul.f32 %v622_v14, %v2025_v21  ;;  %v628_v4 = vmul.f32 %v626_v15, %v2028_v22 }
 0x281   : > { %1349 = vmatprep.subr.bf16.mxu1 %v1348_v16 }
 0x282   : > { %v643_v23 = vpop.permute.xlu1 %642  ;;  %1351 = vmatpush1.bf16.msra.mxu1 %v1350_v17  ;;  %v641_v24 = vpop.permute.xlu0 %640  ;;  %v682_v28 = vsel %vm467_vm4, %v628_v4, %v672_v59  ;;  %v681_v30 = vsel %vm467_vm4, %v627_v57, %v671_v20 }
 0x283   : > { %v648_v31 = vsel %vm424_vm8, %v643_v23, %v641_v24  ;;  %v1352_v32 = vpack.c.bf16 %v682_v28, %v680_v27  ;;  %v1354_v33 = vpack.c.bf16 %v681_v30, %v679_v29  ;;  %v644_v8 = vsel %vm424_vm8, %v641_v24, %v643_v23 }
 0x284   : > { %v650_v36 = vmul.f32 %v2034_v39, %v648_v31  ;;  %v649_v9 = vmul.f32 %v2040_v46, %v644_v8 }
 0x285   : > { %1353 = vmatprep.subr.bf16.mxu1 %v1352_v32 }
 0x286   : > { %1355 = vmatpush1.bf16.msra.mxu1 %v1354_v33 }
 0x287   : > { %1324 = vmatprep.subr.msk.mxu1 %vm467_vm4, %v650_v36 }
 0x28a   : > { %1325 = vmatpush1.msk.msra.mxu1 %vm467_vm4, %v649_v9 }
 0x28b   : > { %1326 = vmatmul.mubr.msk.f32.vlgmr.msra.gmra.mrb[0].mxu1 %vm476_vm9, %v264_v40 }
 0x28c   : > { %1177 = vmatprep.mubr.f32.mxu1 %v1667_v2 }
 0x35e   : > { %v758_v41 = vpop.f32.mrb[0].mxu1 }
 0x35f   : > { %v760_v42 = vpop.f32.mrb[1].mxu1 }
 0x360   : > { %v765_v43 = vcombine.low %v758_v41, %v760_v42 }
 0x362   : > { %v2113_v44 = vadd.f32 %v765_v43, %v1904_v0 }
 0x364   : > { %819 = vrot.lane.b32.xlu0 %v2113_v44, %s1665_s9  ;;  %788 = vrot.lane.b32.xlu1 %v2113_v44, %s1662_s21  ;;  %v773_v2 = vcombine.high %v2113_v44, %v2113_v44  ;;  %v818_v61 = vmul.f32 %v2113_v44, %v2001_v54 }
 0x366   : > { %v876_v59 = vcombine.high %v818_v61, %v818_v61 }
 0x368   : > { %841 = vrot.lane.b32.xlu0 %v2113_v44, %s1666_s28  ;;  %810 = vrot.lane.b32.xlu1 %v2113_v44, %s1661_s23 }
 0x36c   : > { %777 = vrot.lane.b32.xlu1 %v2113_v44, %s1663_s6  ;;  %785 = vrot.lane.b32.xlu0 %v773_v2, %s1662_s21 }
 0x370   : > { %799 = vrot.lane.b32.xlu1 %v2113_v44, %s1664_s8  ;;  %807 = vrot.lane.b32.xlu0 %v773_v2, %s1661_s23 }
 0x374   : > { %821 = vrot.lane.b32.xlu1 %v773_v2, %s1665_s9  ;;  %774 = vrot.lane.b32.xlu0 %v773_v2, %s1663_s6 }
 0x378   : > { %843 = vrot.lane.b32.xlu1 %v773_v2, %s1666_s28  ;;  %796 = vrot.lane.b32.xlu0 %v773_v2, %s1664_s8 }
 0x37c   : > { %832 = vrot.lane.b32.xlu1 %v773_v2, %s1668_s25  ;;  %830 = vrot.lane.b32.xlu0 %v2113_v44, %s1668_s25 }
 0x380   : > { %854 = vrot.lane.b32.xlu1 %v773_v2, %s1669_s12  ;;  %852 = vrot.lane.b32.xlu0 %v2113_v44, %s1669_s12 }
 0x3d6   : > { %v820_v0 = vpop.permute.xlu0 %819  ;;  %v789_v45 = vpop.permute.xlu1 %788 }
 0x3da   : > { %v842_v47 = vpop.permute.xlu0 %841  ;;  %v811_v48 = vpop.permute.xlu1 %810 }
 0x3de   : > { %v778_v49 = vpop.permute.xlu1 %777  ;;  %v786_v50 = vpop.permute.xlu0 %785 }
 0x3df   : > { %v790_v56 = vsel %vm292_vm0, %v789_v45, %v786_v50  ;;  %v793_v58 = vsel %vm292_vm0, %v786_v50, %v789_v45 }
 0x3e0   : > { %v794_v63 = vmul.f32 %v793_v58, %v1943_v12  ;;  %v795_v1 = vmul.f32 %v790_v56, %v1946_v13 }
 0x3e2   : > { %v800_v51 = vpop.permute.xlu1 %799  ;;  %v808_v55 = vpop.permute.xlu0 %807  ;;  %v865_v57 = vrot.slane %v794_v63, 4  ;;  %v866_v4 = vrot.slane %v795_v1, 4 }
 0x3e3   : > { %v815_v60 = vsel %vm332_vm1, %v808_v55, %v811_v48  ;;  %v812_v62 = vsel %vm332_vm1, %v811_v48, %v808_v55 }
 0x3e4   : > { %v816_v16 = vmul.f32 %v815_v60, %v1952_v18  ;;  %v817_v54 = vmul.f32 %v812_v62, %v1955_v19 }
 0x3e6   : > { %v822_v6 = vpop.permute.xlu1 %821  ;;  %v775_v7 = vpop.permute.xlu0 %774  ;;  %v871_v33 = vrot.slane %v816_v16, 4  ;;  %v872_v40 = vrot.slane %v817_v54, 4 }
 0x3e7   : > { %v823_v10 = vsel %vm364_vm5, %v820_v0, %v822_v6  ;;  %v827_v11 = vsel %vm364_vm5, %v822_v6, %v820_v0  ;;  %v779_v14 = vsel %vm272_vm2, %v778_v49, %v775_v7  ;;  %v782_v15 = vsel %vm272_vm2, %v775_v7, %v778_v49 }
 0x3e8   : > { %v828_v17 = vmul.f32 %v823_v10, %v1994_v52  ;;  %v829_v20 = vmul.f32 %v827_v11, %v1997_v53  ;;  %v783_v23 = vmul.f32 %v782_v15, %v1962_v25  ;;  %v784_v24 = vmul.f32 %v779_v14, %v1965_v26 }
 0x3ea   : > { %v844_v27 = vpop.permute.xlu1 %843  ;;  %v797_v28 = vpop.permute.xlu0 %796  ;;  %v880_v41 = vrot.slane %v828_v17, 4  ;;  %v881_v42 = vrot.slane %v829_v20, 4  ;;  %v890_v2 = vsel %vm467_vm4, %v783_v23, %v865_v57  ;;  %v891_v49 = vsel %vm467_vm4, %v784_v24, %v866_v4  ;;  %v769_v57 = vld [vmem:[#allocation5 + $0x4] sm:$0xf] }
 0x3eb   : > { %v845_v29 = vsel %vm404_vm6, %v842_v47, %v844_v27  ;;  %v849_v30 = vsel %vm404_vm6, %v844_v27, %v842_v47  ;;  %v801_v31 = vsel %vm312_vm3, %v800_v51, %v797_v28  ;;  %v804_v32 = vsel %vm312_vm3, %v797_v28, %v800_v51 }
 0x3ec   : > { %v850_v36 = vmul.f32 %v845_v29, %v2010_v3  ;;  %v851_v8 = vmul.f32 %v849_v30, %v2013_v5  ;;  %v805_v9 = vmul.f32 %v804_v32, %v1974_v34  ;;  %v806_v43 = vmul.f32 %v801_v31, %v1977_v35 }
 0x3ed   : > { %v894_v62 = vsel %vm467_vm4, %v818_v61, %v880_v41  ;;  %v895_v11 = vsel %vm467_vm4, %v876_v59, %v881_v42 }
 0x3ee   : > { %v886_v0 = vrot.slane %v850_v36, 4  ;;  %v892_v45 = vsel %vm467_vm4, %v805_v9, %v871_v33  ;;  %v833_v47 = vpop.permute.xlu1 %832  ;;  %v831_v48 = vpop.permute.xlu0 %830  ;;  %v893_v55 = vsel %vm467_vm4, %v806_v43, %v872_v40  ;;  %v887_v58 = vrot.slane %v851_v8, 4 }
 0x3ef   : > { %v834_v50 = vsel %vm384_vm7, %v831_v48, %v833_v47  ;;  %v838_v51 = vsel %vm384_vm7, %v833_v47, %v831_v48  ;;  %v1358_v56 = vpack.c.bf16 %v892_v45, %v890_v2  ;;  %v1356_v1 = vpack.c.bf16 %v893_v55, %v891_v49 }
 0x3f0   : > { %v839_v60 = vmul.f32 %v834_v50, %v2025_v21  ;;  %v840_v63 = vmul.f32 %v838_v51, %v2028_v22 }
 0x3f1   : > { %1357 = vmatprep.subr.bf16.mxu0 %v1356_v1 }
 0x3f2   : > { %v896_v6 = vsel %vm467_vm4, %v839_v60, %v886_v0  ;;  %v855_v7 = vpop.permute.xlu1 %854  ;;  %v853_v10 = vpop.permute.xlu0 %852  ;;  %v897_v14 = vsel %vm467_vm4, %v840_v63, %v887_v58  ;;  %1359 = vmatpush1.bf16.msra.mxu0 %v1358_v56 }
 0x3f3   : > { %v860_v15 = vsel %vm424_vm8, %v855_v7, %v853_v10  ;;  %v1360_v16 = vpack.c.bf16 %v897_v14, %v895_v11  ;;  %v1362_v54 = vpack.c.bf16 %v896_v6, %v894_v62  ;;  %v856_v20 = vsel %vm424_vm8, %v853_v10, %v855_v7 }
 0x3f4   : > { %v862_v17 = vmul.f32 %v2034_v39, %v860_v15  ;;  %v861_v61 = vmul.f32 %v2040_v46, %v856_v20 }
 0x3f5   : > { %1361 = vmatprep.subr.bf16.mxu0 %v1360_v16 }
 0x3f6   : > { %1363 = vmatpush1.bf16.msra.mxu0 %v1362_v54 }
 0x3f7   : > { %1327 = vmatprep.subr.msk.mxu0 %vm467_vm4, %v862_v17 }
 0x3fa   : > { %1328 = vmatpush1.msk.msra.mxu0 %vm467_vm4, %v861_v61 }
 0x3fb   : > { %1329 = vmatmul.mubr.msk.f32.vlgmr.msra.gmra.mrb[2].mxu0 %vm476_vm9, %v769_v57 }
 0x4ce   : > { %v973_v59 = vpop.f32.mrb[2].mxu0 }
 0x4cf   : > { %v978_v4 = vmax.f32 %v973_v59, 0.0  ;;  %v975_v23 = vpop.f32.mrb[3].mxu0 }
 0x4d0   : > { %v979_v24 = vmax.f32 %v975_v23, 0.0 }
 0x4d1   : > { %1028 = vrot.lane.b32.xlu0 %v978_v4, %s1665_s9  ;;  %996 = vrot.lane.b32.xlu1 %v978_v4, %s1662_s21  ;;  %v1026_v51 = vmul.f32 %v978_v4, %v1981_v37 }
 0x4d2   : > { %v1027_v56 = vmul.f32 %v979_v24, %v1984_v38 }
 0x4d5   : > { %1050 = vrot.lane.b32.xlu0 %v978_v4, %s1666_s28  ;;  %1018 = vrot.lane.b32.xlu1 %v978_v4, %s1661_s23 }
 0x4d9   : > { %985 = vrot.lane.b32.xlu1 %v978_v4, %s1663_s6  ;;  %993 = vrot.lane.b32.xlu0 %v979_v24, %s1662_s21  ;;  %s1583_s21 = scalar_lea.vmem %s1582_s10, 256 }
 0x4dd   : > { %1007 = vrot.lane.b32.xlu1 %v978_v4, %s1664_s8  ;;  %1015 = vrot.lane.b32.xlu0 %v979_v24, %s1661_s23  ;;  %s1577_s23 = scalar_lea.vmem %s2256_s30, 128 }
 0x4de   : > { %p1578_p10 = scmp.ne.s32.totalorder %s2256_s30, %s1577_s23  ;;  %p1585_p2 = scmp.lt.s32.totalorder %s1583_s21, %s1577_s23 }
 0x4e0   : > { %p1579_p3 = pnand %p1578_p10, %p1841_p5  ;;  %p1586_p1 = por %p1585_p2, %p1584_p12 }
 0x4e1   : > { %1030 = vrot.lane.b32.xlu1 %v979_v24, %s1665_s9  ;;  %981 = vrot.lane.b32.xlu0 %v979_v24, %s1663_s6 }
 0x4e2   : > { %p1580_p7 = pneg %p1579_p3 }
 0x4e4   : > { %p1587_p4 = pnand %p1586_p1, %p1580_p7 }
 0x4e5   : > { %1052 = vrot.lane.b32.xlu1 %v979_v24, %s1666_s28  ;;  %1004 = vrot.lane.b32.xlu0 %v979_v24, %s1664_s8 }
 0x4e9   : > { %1041 = vrot.lane.b32.xlu1 %v979_v24, %s1668_s25  ;;  %1039 = vrot.lane.b32.xlu0 %v978_v4, %s1668_s25 }
 0x4ed   : > { %1063 = vrot.lane.b32.xlu1 %v979_v24, %s1669_s12  ;;  %1061 = vrot.lane.b32.xlu0 %v978_v4, %s1669_s12 }
 0x543   : > { %v1029_v27 = vpop.permute.xlu0 %1028  ;;  %v997_v28 = vpop.permute.xlu1 %996 }
 0x547   : > { %v1051_v29 = vpop.permute.xlu0 %1050  ;;  %v1019_v30 = vpop.permute.xlu1 %1018 }
 0x54b   : > { %v986_v31 = vpop.permute.xlu1 %985  ;;  %v994_v32 = vpop.permute.xlu0 %993 }
 0x54c   : > { %v998_v8 = vsel %vm292_vm0, %v997_v28, %v994_v32  ;;  %v1001_v9 = vsel %vm292_vm0, %v994_v32, %v997_v28 }
 0x54d   : > { %v1002_v41 = vmul.f32 %v1001_v9, %v1943_v12  ;;  %v1003_v42 = vmul.f32 %v998_v8, %v1946_v13  ;;  %v771_v9 = vld [vmem:[#allocation7 + $0x4] sm:$0xf] }
 0x54f   : > { %v1008_v33 = vpop.permute.xlu1 %1007  ;;  %v1016_v36 = vpop.permute.xlu0 %1015  ;;  %v1074_v58 = vrot.slane %v1002_v41, 4  ;;  %v1075_v60 = vrot.slane %v1003_v42, 4 }
 0x550   : > { %v1023_v40 = vsel %vm332_vm1, %v1016_v36, %v1019_v30  ;;  %v1020_v43 = vsel %vm332_vm1, %v1019_v30, %v1016_v36 }
 0x551   : > { %v1024_v50 = vmul.f32 %v1023_v40, %v1952_v18  ;;  %v1025_v12 = vmul.f32 %v1020_v43, %v1955_v19 }
 0x553   : > { %v1031_v2 = vpop.permute.xlu1 %1030  ;;  %v982_v0 = vpop.permute.xlu0 %981  ;;  %v1080_v7 = vrot.slane %v1024_v50, 4 }
 0x554   : > { %v1032_v45 = vsel %vm364_vm5, %v1029_v27, %v1031_v2  ;;  %v1036_v47 = vsel %vm364_vm5, %v1031_v2, %v1029_v27  ;;  %v987_v48 = vsel %vm272_vm2, %v986_v31, %v982_v0  ;;  %v990_v49 = vsel %vm272_vm2, %v982_v0, %v986_v31 }
 0x555   : > { %v1037_v13 = vmul.f32 %v1032_v45, %v1994_v52  ;;  %v1038_v55 = vmul.f32 %v1036_v47, %v1997_v53  ;;  %v991_v63 = vmul.f32 %v990_v49, %v1962_v25  ;;  %v992_v1 = vmul.f32 %v987_v48, %v1965_v26 }
 0x556   : > { %v1081_v25 = vrot.slane %v1025_v12, 4 }
 0x557   : > { %v1053_v62 = vpop.permute.xlu1 %1052  ;;  %v1005_v6 = vpop.permute.xlu0 %1004  ;;  %v1086_v11 = vrot.slane %v1037_v13, 4  ;;  %v1087_v26 = vrot.slane %v1038_v55, 4  ;;  %v1096_v15 = vsel %vm467_vm4, %v991_v63, %v1074_v58  ;;  %v1097_v61 = vsel %vm467_vm4, %v992_v1, %v1075_v60 }
 0x558   : > { %v1054_v18 = vsel %vm404_vm6, %v1051_v29, %v1053_v62  ;;  %v1058_v37 = vsel %vm404_vm6, %v1053_v62, %v1051_v29  ;;  %v1009_v19 = vsel %vm312_vm3, %v1008_v33, %v1005_v6  ;;  %v1012_v52 = vsel %vm312_vm3, %v1005_v6, %v1008_v33 }
 0x559   : > { %v1059_v53 = vmul.f32 %v1054_v18, %v2010_v3  ;;  %v1060_v38 = vmul.f32 %v1058_v37, %v2013_v5  ;;  %v1013_v10 = vmul.f32 %v1012_v52, %v1974_v34  ;;  %v1014_v14 = vmul.f32 %v1009_v19, %v1977_v35 }
 0x55a   : > { %v1100_v24 = vsel %vm467_vm4, %v1026_v51, %v1086_v11  ;;  %v1101_v30 = vsel %vm467_vm4, %v1027_v56, %v1087_v26 }
 0x55b   : > { %v1092_v16 = vrot.slane %v1059_v53, 4  ;;  %v1098_v54 = vsel %vm467_vm4, %v1013_v10, %v1080_v7  ;;  %v1042_v17 = vpop.permute.xlu1 %1041  ;;  %v1040_v20 = vpop.permute.xlu0 %1039  ;;  %v1099_v34 = vsel %vm467_vm4, %v1014_v14, %v1081_v25  ;;  %v1093_v59 = vrot.slane %v1060_v38, 4 }
 0x55c   : > { %v1043_v3 = vsel %vm384_vm7, %v1040_v20, %v1042_v17  ;;  %v1047_v5 = vsel %vm384_vm7, %v1042_v17, %v1040_v20  ;;  %v1366_v57 = vpack.c.bf16 %v1098_v54, %v1096_v15  ;;  %v1364_v23 = vpack.c.bf16 %v1099_v34, %v1097_v61 }
 0x55d   : > { %v1048_v4 = vmul.f32 %v1043_v3, %v2025_v21  ;;  %v1049_v35 = vmul.f32 %v1047_v5, %v2028_v22 }
 0x55e   : > { %1365 = vmatprep.subr.bf16.mxu1 %v1364_v23 }
 0x55f   : > { %v1102_v27 = vsel %vm467_vm4, %v1048_v4, %v1092_v16  ;;  %v1064_v28 = vpop.permute.xlu1 %1063  ;;  %v1062_v29 = vpop.permute.xlu0 %1061  ;;  %v1103_v31 = vsel %vm467_vm4, %v1049_v35, %v1093_v59  ;;  %1367 = vmatpush1.bf16.msra.mxu1 %v1366_v57 }
 0x560   : > { %v1069_v32 = vsel %vm424_vm8, %v1064_v28, %v1062_v29  ;;  %v1368_v21 = vpack.c.bf16 %v1103_v31, %v1101_v30  ;;  %v1370_v33 = vpack.c.bf16 %v1102_v27, %v1100_v24  ;;  %v1065_v36 = vsel %vm424_vm8, %v1062_v29, %v1064_v28 }
 0x561   : > { %v1071_v22 = vmul.f32 %v2034_v39, %v1069_v32  ;;  %v1070_v8 = vmul.f32 %v2040_v46, %v1065_v36 }
 0x562   : > { %1369 = vmatprep.subr.bf16.mxu1 %v1368_v21 }
 0x563   : > { %1371 = vmatpush1.bf16.msra.mxu1 %v1370_v33 }
 0x564   : > { %1330 = vmatprep.subr.msk.mxu1 %vm467_vm4, %v1071_v22 }
 0x567   : > { %1331 = vmatpush1.msk.msra.mxu1 %vm467_vm4, %v1070_v8 }
 0x568   : > { %1332 = vmatmul.mubr.msk.f32.vlgmr.msra.gmra.mrb[2].mxu1 %vm476_vm9, %v771_v9 }
 0x63b   : > { %v1179_v40 = vpop.f32.mrb[2].mxu1 }
 0x63c   : > { %v1181_v41 = vpop.f32.mrb[3].mxu1 }
 0x63d   : > { %v1186_v39 = vcombine.low %v1179_v40, %v1181_v41 }
 0x63f   : > { %v1188_v42 = vadd.f32 %v1186_v39, %v2113_v44 }
 0x641   : > { %1189 = vst [vmem:[%s257_s26] sm:$0xff] %v1188_v42 }
 0x642   : > { %1590 = shalt.err (!%p1587_p4)
}
 0x643   : > { %s1591_s7 = scalar_lea.hbm %s2254_s14, 128  ;;  %s1595_s9 = scalar_lea.hbm %s2302_s4, 256 }
 0x644   : > { %p1592_p0 = scmp.ne.s32.totalorder %s2254_s14, %s1591_s7  ;;  %p1596_p8 = scmp.lt.u32.totalorder %s2254_s14, %s2302_s4 }
 0x645   : > { %p1597_p13 = scmp.lt.u32.totalorder %s1595_s9, %s1591_s7  ;;  %p1599_p10 = scmp.lt.u32.totalorder %s1591_s7, %s2254_s14 }
 0x646   : > { %p1593_p9 = pnand %p1592_p0, %p1841_p5 }
 0x647   : > { %p1598_p6 = por %p1597_p13, %p1596_p8 }
 0x648   : > { %p1594_p11 = pneg %p1593_p9 }
 0x649   : > { %p1600_p3 = por %p1599_p10, %p1598_p6 }
 0x64b   : > { %p1601_p7 = pnand %p1600_p3, %p1594_p11 }
 0x64d   : > { %1604 = shalt.err (!%p1601_p7)
}
 0x64e   : > { %1386 = dma.vmem_to_hbm [thread:$0]  (%p1841_p5), %s2256_s30, 128, %s2254_s14, %s1191_s20  }
 0x64f PF: > { %s1217_s12 = sand.u32 1, %s1639_s15   ;;  %p2320_p12 = scmp.ne.s32.totalorder %s2307_s22, 0 }
 0x650   : > { %p2321_p2 = scmp.ge.s32.totalorder %s1651_s18, 2  ;;  %s1218_s27 = scalar_lea.sflag [#allocation4], %s1217_s12 }
 0x652   : > { %p1403_p1 = pnand %p2321_p2, %p2320_p12 }
 0x654   : > { %1634 = dma.done.wait (!%p1403_p1), %s1218_s27, 128  }
 0x655   : > { %1636 = vsyncadd (!%p1403_p1), %s1218_s27, 4294967168  ;;  %p19_p4 = scmp.ge.s32.totalorder %s1827_s11, 4   ;;  %s2322_s15 = smov %s1643_s16 }
 0x656   : > { %s2323_s16 = smov %s1647_s17  ;;  %s2324_s17 = smov %s1837_s13 }
 0x657   : > { %s2325_s18 = smov %s1827_s11  ;;  %21 = sbr.rel (!%p19_p4) target bundleno = 7 (0x7), region = 95 }
 0x65e   :  { %1223 = vsyncpa [#allocation3], 1 }
 0x65f   :  { %1225 = vsyncpa [#allocation3 + $0x1], 1 }
 0x660   :  { %1226 = vsyncpa [#allocation6], 1 }
 0x661   :  { %1227 = vsyncpa [#allocation9], 1 }
 0x662   :  { %1228 = vsyncpa [#allocation4], 1 }
 0x663   :  { %1230 = vsyncpa [#allocation4 + $0x1], 1 }

</bundles_post_ra>
